<compile_context>
chip_gen: v6e
topology: v6e:2x2x1
jax: 0.10.0
libtpu: 0.0.40
codegen_flags: <defaults>
</compile_context>

<pallas_src>
import math

import jax
import jax.numpy as jnp
from jax.experimental import pallas as pl
from jax.experimental.pallas import tpu as pltpu

HEAD = 4                      # ComAttention heads
D_MODEL = 32                  # MultiHeadedAttention(4, 32) is hard-coded in the module
D_K = D_MODEL // HEAD
MHA_H = 4
MHA_DK = D_MODEL // MHA_H

DENSE_NAMES = (
    "wq", "bq", "wk", "bk",
    "wpq", "bpq", "wpk", "bpk", "wpv", "bpv", "wpo", "bpo",
    "wnq", "bnq", "wnk", "bnk", "wnv", "bnv", "wno", "bno",
    "wvp", "bvp", "wvn", "bvn", "wgp", "bgp",
)
CONV_NAMES = ("f1w", "f1b", "f2w", "f2b", "f3w", "f3b")
PARAM_NAMES = DENSE_NAMES + CONV_NAMES

PACKED_ORDER = ("qk", "pqkv", "nqkv", "po", "no", "pg", "ng")


def _param_shapes():
    D, H = D_MODEL, HEAD
    shapes = {}
    for n in DENSE_NAMES:
        shapes[n] = (1, D) if n.startswith("b") else (D, D)
    shapes.update({
        "f1w": (2 * H, H), "f1b": (2 * H,),     # Conv2d(head, 2*head, 1)
        "f2w": (H, 2 * H), "f2b": (H,),         # Conv2d(2*head, head, 1)
        "f3w": (1, H),     "f3b": (1,),         # Conv2d(head, 1, 1)
    })
    return shapes


def init_params(key):
    """Deterministic synthetic init (dense weights stored as (in, out))."""
    shapes = _param_shapes()
    params = {}
    keys = jax.random.split(key, len(PARAM_NAMES))
    for name, k in zip(PARAM_NAMES, keys):
        shp = shapes[name]
        is_bias = name.startswith("b") or name.endswith("b")
        if is_bias:
            params[name] = 0.05 * jax.random.normal(k, shp, jnp.float32)
        else:
            fan_in = shp[0] if name in DENSE_NAMES else shp[1]
            params[name] = jax.random.normal(k, shp, jnp.float32) / math.sqrt(fan_in)
    return params


# ----------------------------- wrapper-side packing ---------------------------

def pack_params(params):
    """Collapse the 1x1-conv stack, fold its weights + 1/sqrt(d_k) into the q
    projection, and concatenate the dense weights into a few [W; b] slabs."""
    f1w, f1b = params["f1w"], params["f1b"]          # (2H, H), (2H,)
    f2w, f2b = params["f2w"], params["f2b"]          # (H, 2H), (H,)
    f3w, f3b = params["f3w"], params["f3b"]          # (1, H),  (1,)
    # Conv2d(kernel=1) stack with no nonlinearity == affine map over the head axis:
    #   fusion(scores) = sum_h W_eff[h] * scores_h + b_eff
    w_eff = f3w @ f2w @ f1w                           # (1, H)
    b_eff = (f3w @ (f2w @ f1b + f2b) + f3b)[0]        # scalar
    # Fold W_eff[h] / sqrt(d_k) into the q-projection columns of head h so the
    # whole conv gate is one full K=32 contraction: (x@wq_eff+bq_eff) @ (x@wk+bk)^T.
    col_scale = jnp.repeat(w_eff[0] / math.sqrt(D_K), D_K)          # (D,)
    wq_eff = params["wq"] * col_scale[None, :]
    bq_eff = params["bq"] * col_scale[None, :]

    def slab(ws, bs):
        w = jnp.concatenate(ws, axis=1)               # (D, N)
        b = jnp.concatenate(bs, axis=1)               # (1, N)
        return jnp.concatenate([w, b], axis=0).astype(jnp.float32)   # (D+1, N)

    return {
        "qk":   slab([wq_eff, params["wk"]], [bq_eff, params["bk"]]),
        "pqkv": slab([params["wpq"], params["wpk"], params["wpv"]],
                     [params["bpq"], params["bpk"], params["bpv"]]),
        "nqkv": slab([params["wnq"], params["wnk"], params["wnv"]],
                     [params["bnq"], params["bnk"], params["bnv"]]),
        "po":   slab([params["wpo"]], [params["bpo"]]),
        "no":   slab([params["wno"]], [params["bno"]]),
        "pg":   slab([params["wvp"], params["wgp"]], [params["bvp"], params["bgp"]]),
        # torch quirk preserved: gate_p weights are reused for the n-branch gate.
        "ng":   slab([params["wvn"], params["wgp"]], [params["bvn"], params["bgp"]]),
        "beff": jnp.asarray(b_eff, jnp.float32).reshape(1, 1),
    }


# ----------------------------- in-kernel helpers ------------------------------

def _affine(x2, wb_ref):
    """x2 @ W + b with [W; b] packed as a (D_MODEL+1, N) slab."""
    w = wb_ref[:D_MODEL, :]
    b = wb_ref[D_MODEL:D_MODEL + 1, :]
    return jnp.dot(x2, w, preferred_element_type=jnp.float32) + b


def _softmax_last(x):
    m = jnp.max(x, axis=-1, keepdims=True)
    e = jnp.exp(x - m)
    return e * pl.reciprocal(jnp.sum(e, axis=-1, keepdims=True), approx=True)


def _mha(x2, bsd, mask, wb_qkv_ref, wb_o_ref):
    """Masked multi-head attention (eval mode, dropout = identity), batched over Bb."""
    Bb, S, D = bsd
    qkv = _affine(x2, wb_qkv_ref).reshape(Bb, S, 3 * D)     # one wide q|k|v matmul
    q = qkv[:, :, 0 * D:1 * D]
    k = qkv[:, :, 1 * D:2 * D]
    v = qkv[:, :, 2 * D:3 * D]
    scale = 1.0 / math.sqrt(MHA_DK)
    heads = []
    for h in range(MHA_H):
        sl = slice(h * MHA_DK, (h + 1) * MHA_DK)
        s = jnp.einsum('bqd,bkd->bqk', q[:, :, sl], k[:, :, sl],
                       preferred_element_type=jnp.float32) * scale
        s = jnp.where(mask == 0.0, -1e9, s)                 # masked_fill(mask == 0, -1e9)
        a = _softmax_last(s)
        heads.append(jnp.einsum('bqk,bkd->bqd', a, v[:, :, sl],
                                preferred_element_type=jnp.float32))
    o = jnp.concatenate(heads, axis=-1).reshape(Bb * S, D)  # concat heads ->
    return _affine(o, wb_o_ref)                             # single (.,32)@(32,32) out-proj


# --------------------------------- the kernel ---------------------------------

def com_attention_kernel(feat_ref, dmask_ref, qk_ref, pqkv_ref, nqkv_ref,
                         po_ref, no_ref, pg_ref, ng_ref, beff_ref, out_ref):
    Bb, S, D = feat_ref.shape
    x2 = feat_ref[...].reshape(Bb * S, D)
    dmask = dmask_ref[...]

    # ---- conv gate: folded to one wide projection + one batched contraction ----
    qk = _affine(x2, qk_ref).reshape(Bb, S, 2 * D)
    q_s = qk[:, :, :D]                                   # pre-scaled by W_eff[h]/sqrt(d_k)
    k_s = qk[:, :, D:]
    fused = jnp.einsum('bqd,bkd->bqk', q_s, k_s,
                       preferred_element_type=jnp.float32) + beff_ref[0, 0]
    # NOTE: torch's `test_sco = softmax(fusion(scores), -1)` is dead code (unused).
    sig = 1.0 / (1.0 + jnp.exp(-fused))                  # sigmoid(fusion(scores))
    p_mask = jnp.where(sig > 0.5, sig, 0.0) * dmask
    n_mask = jnp.where(sig <= 0.5, sig, 0.0) * dmask

    # ---- two masked multi-head attentions over the features ----
    # TODO(synk): MultiHeadedAttention source isn't provided; with pm=nm=None this
    # implements standard masked MHA (eval mode); returned pm/nm maps don't feed out.
    p2 = _mha(x2, (Bb, S, D), p_mask, pqkv_ref, po_ref)
    n2 = _mha(x2, (Bb, S, D), n_mask, nqkv_ref, no_ref)

    # ---- gated combination of the two branches ----
    pg = _affine(p2, pg_ref)                             # [v_p(p) | gate_p(p)]
    ng = _affine(n2, ng_ref)                             # [v_n(n) | gate_p(n)]
    vp, ep = pg[:, :D], pg[:, D:]
    vn, en = ng[:, :D], ng[:, D:]
    m = jnp.maximum(ep, en)                              # softmax over the stacked dim 0
    eep = jnp.exp(ep - m)
    een = jnp.exp(en - m)
    out = (vp * eep + vn * een) * pl.reciprocal(eep + een, approx=True)
    out_ref[...] = out.reshape(Bb, S, D).astype(out_ref.dtype)


# --------------------------------- wrapper ------------------------------------

def _pick_block_batch(B, S):
    # Aim for >= ~256 rows of work per grid step (amortizes per-step overhead at
    # small S) while the per-step (S,S) working set stays well under scoped VMEM.
    per_elem = 4 * (10 * S * S + 24 * S * D_MODEL)        # rough fp32 bytes / batch elem
    by_vmem = max(1, (12 * 2 ** 20) // max(per_elem, 1))
    target = int(max(1, min(B, max(1, 256 // max(S, 1)), by_vmem, 256)))
    for b in range(target, 0, -1):                        # largest divisor of B <= target
        if B % b == 0:
            return b
    return 1


def com_attention(feature, data_mask, params):
    B, S, D = feature.shape
    assert D == D_MODEL
    packed = pack_params(params)
    bblk = _pick_block_batch(B, S)
    grid = (B // bblk,)

    in_specs = [
        pl.BlockSpec((bblk, S, D), lambda i: (i, 0, 0)),   # feature
        pl.BlockSpec((bblk, S, S), lambda i: (i, 0, 0)),   # data_mask
    ]
    args = [feature, data_mask]
    for name in PACKED_ORDER:
        arr = packed[name]
        in_specs.append(pl.BlockSpec(arr.shape, lambda i: (0, 0)))
        args.append(arr)
    in_specs.append(pl.BlockSpec(memory_space=pltpu.MemorySpace.SMEM))  # b_eff scalar
    args.append(packed["beff"])

    # Raise the scoped VMEM limit only when the per-step footprint warrants it.
    # TODO(synk): for very large S, additionally tile the query dim with
    # flash-style streaming of key/value blocks for the two MHA branches.
    est = bblk * 4 * (10 * S * S + 24 * S * D) + 4 * (D + 1) * 448 * 2
    vmem_limit = None
    if est > 24 * 2 ** 20:
        vmem_limit = int(min(max(2 * est, 32 * 2 ** 20), 96 * 2 ** 20))

    return pl.pallas_call(
        com_attention_kernel,
        out_shape=jax.ShapeDtypeStruct((B, S, D), jnp.float32),
        grid=grid,
        in_specs=in_specs,
        out_specs=pl.BlockSpec((bblk, S, D), lambda i: (i, 0, 0)),
        compiler_params=pltpu.CompilerParams(
            dimension_semantics=("parallel",),
            vmem_limit_bytes=vmem_limit),
    )(*args)


if __name__ == "__main__":
    key = jax.random.PRNGKey(0)
    kf, km, kp = jax.random.split(key, 3)
    B, S = 2, 8
    feature = jax.random.normal(kf, (B, S, D_MODEL), jnp.float32)
    data_mask = (jax.random.uniform(km, (B, S, S)) > 0.2).astype(jnp.float32)
    params = init_params(kp)

    out = com_attention(feature, data_mask, params)
    out = jax.block_until_ready(out)
    assert out.shape == (B, S, D_MODEL)
    assert bool(jnp.all(jnp.isfinite(out)))
    print("KERNEL_OK")
</pallas_src>

<mosaic_0001>
module attributes {stable_mosaic.version = 11 : i64} {
  func.func @com_attention_kernel(%arg0: i32, %arg1: memref<2x8x32xf32, #tpu.memory_space<vmem>>, %arg2: memref<2x8x8xf32, #tpu.memory_space<vmem>>, %arg3: memref<33x64xf32, #tpu.memory_space<vmem>>, %arg4: memref<33x96xf32, #tpu.memory_space<vmem>>, %arg5: memref<33x96xf32, #tpu.memory_space<vmem>>, %arg6: memref<33x32xf32, #tpu.memory_space<vmem>>, %arg7: memref<33x32xf32, #tpu.memory_space<vmem>>, %arg8: memref<33x64xf32, #tpu.memory_space<vmem>>, %arg9: memref<33x64xf32, #tpu.memory_space<vmem>>, %arg10: memref<1x1xf32, #tpu.memory_space<smem>>, %arg11: memref<2x8x32xf32, #tpu.memory_space<vmem>>) attributes {dimension_semantics = [#tpu.dimension_semantics<parallel>], iteration_bounds = array<i64: 1>, scalar_prefetch = 0 : i64, scratch_operands = 0 : i64, tpu.core_type = #tpu.core_type<tc>, window_params = [{transform_indices = @transform_0, window_bounds = array<i64: 2, 8, 32>}, {transform_indices = @transform_1, window_bounds = array<i64: 2, 8, 8>}, {pipeline_mode = #tpu.pipeline_mode<synchronous>, transform_indices = @transform_2, window_bounds = array<i64: 33, 64>}, {pipeline_mode = #tpu.pipeline_mode<synchronous>, transform_indices = @transform_3, window_bounds = array<i64: 33, 96>}, {pipeline_mode = #tpu.pipeline_mode<synchronous>, transform_indices = @transform_4, window_bounds = array<i64: 33, 96>}, {pipeline_mode = #tpu.pipeline_mode<synchronous>, transform_indices = @transform_5, window_bounds = array<i64: 33, 32>}, {pipeline_mode = #tpu.pipeline_mode<synchronous>, transform_indices = @transform_6, window_bounds = array<i64: 33, 32>}, {pipeline_mode = #tpu.pipeline_mode<synchronous>, transform_indices = @transform_7, window_bounds = array<i64: 33, 64>}, {pipeline_mode = #tpu.pipeline_mode<synchronous>, transform_indices = @transform_8, window_bounds = array<i64: 33, 64>}, {transform_indices = @transform_9, window_bounds = array<i64: 1, 1>}, {transform_indices = @transform_10, window_bounds = array<i64: 2, 8, 32>}]} {
    %c0 = arith.constant 0 : index
    %c0_0 = arith.constant 0 : index
    %c0_1 = arith.constant 0 : index
    %0 = vector.load %arg1[%c0, %c0_0, %c0_1] : memref<2x8x32xf32, #tpu.memory_space<vmem>>, vector<2x8x32xf32>
    %1 = vector.shape_cast %0 : vector<2x8x32xf32> to vector<16x32xf32>
    %c0_2 = arith.constant 0 : index
    %c0_3 = arith.constant 0 : index
    %c0_4 = arith.constant 0 : index
    %2 = vector.load %arg2[%c0_2, %c0_3, %c0_4] : memref<2x8x8xf32, #tpu.memory_space<vmem>>, vector<2x8x8xf32>
    %c0_5 = arith.constant 0 : index
    %c0_6 = arith.constant 0 : index
    %3 = vector.load %arg3[%c0_5, %c0_6] : memref<33x64xf32, #tpu.memory_space<vmem>>, vector<32x64xf32>
    %c32 = arith.constant 32 : index
    %c0_7 = arith.constant 0 : index
    %4 = vector.load %arg3[%c32, %c0_7] : memref<33x64xf32, #tpu.memory_space<vmem>>, vector<1x64xf32>
    %cst = arith.constant dense<0.000000e+00> : vector<16x64xf32>
    %5 = tpu.matmul %1, %3, %cst {dimension_numbers = #tpu.dot_dimension_numbers<[1], [0], [0], [1], [0, 0, 1, 1], [], []>} : vector<16x32xf32>, vector<32x64xf32>, vector<16x64xf32> -> vector<16x64xf32>
    %6 = vector.broadcast %4 : vector<1x64xf32> to vector<16x64xf32>
    %7 = arith.addf %5, %6 : vector<16x64xf32>
    %8 = vector.shape_cast %7 : vector<16x64xf32> to vector<2x8x64xf32>
    %9 = vector.extract_strided_slice %8 {offsets = [0, 0, 0], sizes = [2, 8, 32], strides = [1, 1, 1]} : vector<2x8x64xf32> to vector<2x8x32xf32>
    %10 = vector.extract_strided_slice %8 {offsets = [0, 0, 32], sizes = [2, 8, 32], strides = [1, 1, 1]} : vector<2x8x64xf32> to vector<2x8x32xf32>
    "tpu.trace_start"() <{level = 10 : i32, message = "bqd,bkd->bqk"}> : () -> ()
    %cst_8 = arith.constant dense<0.000000e+00> : vector<2x8x8xf32>
    %11 = tpu.matmul %9, %10, %cst_8 {dimension_numbers = #tpu.dot_dimension_numbers<[2], [2], [1], [1], [0, 0, 0, 1, 1, 1], [0], [0]>} : vector<2x8x32xf32>, vector<2x8x32xf32>, vector<2x8x8xf32> -> vector<2x8x8xf32>
    "tpu.trace_stop"() : () -> ()
    %c0_9 = arith.constant 0 : index
    %c0_10 = arith.constant 0 : index
    %12 = memref.load %arg10[%c0_9, %c0_10] : memref<1x1xf32, #tpu.memory_space<smem>>
    %13 = vector.broadcast %12 : f32 to vector<2x8x8xf32>
    %14 = arith.addf %11, %13 : vector<2x8x8xf32>
    %cst_11 = arith.constant 0.000000e+00 : f32
    %15 = vector.broadcast %cst_11 : f32 to vector<2x8x8xf32>
    %16 = arith.subf %15, %14 : vector<2x8x8xf32>
    %17 = math.exp %16 : vector<2x8x8xf32>
    %cst_12 = arith.constant 1.000000e+00 : f32
    %18 = vector.broadcast %cst_12 : f32 to vector<2x8x8xf32>
    %19 = arith.addf %18, %17 : vector<2x8x8xf32>
    %cst_13 = arith.constant 1.000000e+00 : f32
    %20 = vector.broadcast %cst_13 : f32 to vector<2x8x8xf32>
    %21 = arith.divf %20, %19 : vector<2x8x8xf32>
    %cst_14 = arith.constant 5.000000e-01 : f32
    %22 = vector.broadcast %cst_14 : f32 to vector<2x8x8xf32>
    %23 = arith.cmpf ogt, %21, %22 : vector<2x8x8xf32>
    %cst_15 = arith.constant 0.000000e+00 : f32
    %24 = vector.broadcast %cst_15 : f32 to vector<2x8x8xf32>
    %25 = arith.select %23, %21, %24 : vector<2x8x8xi1>, vector<2x8x8xf32>
    %26 = arith.mulf %25, %2 : vector<2x8x8xf32>
    %cst_16 = arith.constant 5.000000e-01 : f32
    %27 = vector.broadcast %cst_16 : f32 to vector<2x8x8xf32>
    %28 = arith.cmpf ole, %21, %27 : vector<2x8x8xf32>
    %cst_17 = arith.constant 0.000000e+00 : f32
    %29 = vector.broadcast %cst_17 : f32 to vector<2x8x8xf32>
    %30 = arith.select %28, %21, %29 : vector<2x8x8xi1>, vector<2x8x8xf32>
    %31 = arith.mulf %30, %2 : vector<2x8x8xf32>
    %c0_18 = arith.constant 0 : index
    %c0_19 = arith.constant 0 : index
    %32 = vector.load %arg4[%c0_18, %c0_19] : memref<33x96xf32, #tpu.memory_space<vmem>>, vector<32x96xf32>
    %c32_20 = arith.constant 32 : index
    %c0_21 = arith.constant 0 : index
    %33 = vector.load %arg4[%c32_20, %c0_21] : memref<33x96xf32, #tpu.memory_space<vmem>>, vector<1x96xf32>
    %cst_22 = arith.constant dense<0.000000e+00> : vector<16x96xf32>
    %34 = tpu.matmul %1, %32, %cst_22 {dimension_numbers = #tpu.dot_dimension_numbers<[1], [0], [0], [1], [0, 0, 1, 1], [], []>} : vector<16x32xf32>, vector<32x96xf32>, vector<16x96xf32> -> vector<16x96xf32>
    %35 = vector.broadcast %33 : vector<1x96xf32> to vector<16x96xf32>
    %36 = arith.addf %34, %35 : vector<16x96xf32>
    %37 = vector.shape_cast %36 : vector<16x96xf32> to vector<2x8x96xf32>
    %38 = vector.extract_strided_slice %37 {offsets = [0, 0, 0], sizes = [2, 8, 32], strides = [1, 1, 1]} : vector<2x8x96xf32> to vector<2x8x32xf32>
    %39 = vector.extract_strided_slice %37 {offsets = [0, 0, 32], sizes = [2, 8, 32], strides = [1, 1, 1]} : vector<2x8x96xf32> to vector<2x8x32xf32>
    %40 = vector.extract_strided_slice %37 {offsets = [0, 0, 64], sizes = [2, 8, 32], strides = [1, 1, 1]} : vector<2x8x96xf32> to vector<2x8x32xf32>
    %41 = vector.extract_strided_slice %38 {offsets = [0, 0, 0], sizes = [2, 8, 8], strides = [1, 1, 1]} : vector<2x8x32xf32> to vector<2x8x8xf32>
    %42 = vector.extract_strided_slice %39 {offsets = [0, 0, 0], sizes = [2, 8, 8], strides = [1, 1, 1]} : vector<2x8x32xf32> to vector<2x8x8xf32>
    "tpu.trace_start"() <{level = 10 : i32, message = "bqd,bkd->bqk"}> : () -> ()
    %cst_23 = arith.constant dense<0.000000e+00> : vector<2x8x8xf32>
    %43 = tpu.matmul %41, %42, %cst_23 {dimension_numbers = #tpu.dot_dimension_numbers<[2], [2], [1], [1], [0, 0, 0, 1, 1, 1], [0], [0]>} : vector<2x8x8xf32>, vector<2x8x8xf32>, vector<2x8x8xf32> -> vector<2x8x8xf32>
    "tpu.trace_stop"() : () -> ()
    %cst_24 = arith.constant 0.353553385 : f32
    %44 = vector.broadcast %cst_24 : f32 to vector<2x8x8xf32>
    %45 = arith.mulf %43, %44 : vector<2x8x8xf32>
    %cst_25 = arith.constant 0.000000e+00 : f32
    %46 = vector.broadcast %cst_25 : f32 to vector<2x8x8xf32>
    %47 = arith.cmpf oeq, %26, %46 : vector<2x8x8xf32>
    %cst_26 = arith.constant -1.000000e+09 : f32
    %48 = vector.broadcast %cst_26 : f32 to vector<2x8x8xf32>
    %49 = arith.select %47, %48, %45 : vector<2x8x8xi1>, vector<2x8x8xf32>
    %cst_27 = arith.constant dense<0xFF800000> : vector<2x8xf32>
    %50 = vector.multi_reduction <maximumf>, %49, %cst_27 [2] : vector<2x8x8xf32> to vector<2x8xf32>
    %51 = vector.shape_cast %50 : vector<2x8xf32> to vector<2x8x1xf32>
    %52 = vector.broadcast %51 : vector<2x8x1xf32> to vector<2x8x8xf32>
    %53 = arith.subf %49, %52 : vector<2x8x8xf32>
    %54 = math.exp %53 : vector<2x8x8xf32>
    %cst_28 = arith.constant dense<0.000000e+00> : vector<2x8xf32>
    %55 = vector.multi_reduction <add>, %54, %cst_28 [2] : vector<2x8x8xf32> to vector<2x8xf32>
    %56 = vector.shape_cast %55 : vector<2x8xf32> to vector<2x8x1xf32>
    %57 = tpu.reciprocal %56 {approx = true} : vector<2x8x1xf32> -> vector<2x8x1xf32>
    %58 = vector.broadcast %57 : vector<2x8x1xf32> to vector<2x8x8xf32>
    %59 = arith.mulf %54, %58 : vector<2x8x8xf32>
    %60 = vector.extract_strided_slice %40 {offsets = [0, 0, 0], sizes = [2, 8, 8], strides = [1, 1, 1]} : vector<2x8x32xf32> to vector<2x8x8xf32>
    "tpu.trace_start"() <{level = 10 : i32, message = "bqk,bkd->bqd"}> : () -> ()
    %cst_29 = arith.constant dense<0.000000e+00> : vector<2x8x8xf32>
    %61 = tpu.matmul %59, %60, %cst_29 {dimension_numbers = #tpu.dot_dimension_numbers<[2], [1], [1], [2], [0, 0, 0, 1, 1, 2], [0], [0]>} : vector<2x8x8xf32>, vector<2x8x8xf32>, vector<2x8x8xf32> -> vector<2x8x8xf32>
    "tpu.trace_stop"() : () -> ()
    %62 = vector.extract_strided_slice %38 {offsets = [0, 0, 8], sizes = [2, 8, 8], strides = [1, 1, 1]} : vector<2x8x32xf32> to vector<2x8x8xf32>
    %63 = vector.extract_strided_slice %39 {offsets = [0, 0, 8], sizes = [2, 8, 8], strides = [1, 1, 1]} : vector<2x8x32xf32> to vector<2x8x8xf32>
    "tpu.trace_start"() <{level = 10 : i32, message = "bqd,bkd->bqk"}> : () -> ()
    %cst_30 = arith.constant dense<0.000000e+00> : vector<2x8x8xf32>
    %64 = tpu.matmul %62, %63, %cst_30 {dimension_numbers = #tpu.dot_dimension_numbers<[2], [2], [1], [1], [0, 0, 0, 1, 1, 1], [0], [0]>} : vector<2x8x8xf32>, vector<2x8x8xf32>, vector<2x8x8xf32> -> vector<2x8x8xf32>
    "tpu.trace_stop"() : () -> ()
    %cst_31 = arith.constant 0.353553385 : f32
    %65 = vector.broadcast %cst_31 : f32 to vector<2x8x8xf32>
    %66 = arith.mulf %64, %65 : vector<2x8x8xf32>
    %cst_32 = arith.constant 0.000000e+00 : f32
    %67 = vector.broadcast %cst_32 : f32 to vector<2x8x8xf32>
    %68 = arith.cmpf oeq, %26, %67 : vector<2x8x8xf32>
    %cst_33 = arith.constant -1.000000e+09 : f32
    %69 = vector.broadcast %cst_33 : f32 to vector<2x8x8xf32>
    %70 = arith.select %68, %69, %66 : vector<2x8x8xi1>, vector<2x8x8xf32>
    %cst_34 = arith.constant dense<0xFF800000> : vector<2x8xf32>
    %71 = vector.multi_reduction <maximumf>, %70, %cst_34 [2] : vector<2x8x8xf32> to vector<2x8xf32>
    %72 = vector.shape_cast %71 : vector<2x8xf32> to vector<2x8x1xf32>
    %73 = vector.broadcast %72 : vector<2x8x1xf32> to vector<2x8x8xf32>
    %74 = arith.subf %70, %73 : vector<2x8x8xf32>
    %75 = math.exp %74 : vector<2x8x8xf32>
    %cst_35 = arith.constant dense<0.000000e+00> : vector<2x8xf32>
    %76 = vector.multi_reduction <add>, %75, %cst_35 [2] : vector<2x8x8xf32> to vector<2x8xf32>
    %77 = vector.shape_cast %76 : vector<2x8xf32> to vector<2x8x1xf32>
    %78 = tpu.reciprocal %77 {approx = true} : vector<2x8x1xf32> -> vector<2x8x1xf32>
    %79 = vector.broadcast %78 : vector<2x8x1xf32> to vector<2x8x8xf32>
    %80 = arith.mulf %75, %79 : vector<2x8x8xf32>
    %81 = vector.extract_strided_slice %40 {offsets = [0, 0, 8], sizes = [2, 8, 8], strides = [1, 1, 1]} : vector<2x8x32xf32> to vector<2x8x8xf32>
    "tpu.trace_start"() <{level = 10 : i32, message = "bqk,bkd->bqd"}> : () -> ()
    %cst_36 = arith.constant dense<0.000000e+00> : vector<2x8x8xf32>
    %82 = tpu.matmul %80, %81, %cst_36 {dimension_numbers = #tpu.dot_dimension_numbers<[2], [1], [1], [2], [0, 0, 0, 1, 1, 2], [0], [0]>} : vector<2x8x8xf32>, vector<2x8x8xf32>, vector<2x8x8xf32> -> vector<2x8x8xf32>
    "tpu.trace_stop"() : () -> ()
    %83 = vector.extract_strided_slice %38 {offsets = [0, 0, 16], sizes = [2, 8, 8], strides = [1, 1, 1]} : vector<2x8x32xf32> to vector<2x8x8xf32>
    %84 = vector.extract_strided_slice %39 {offsets = [0, 0, 16], sizes = [2, 8, 8], strides = [1, 1, 1]} : vector<2x8x32xf32> to vector<2x8x8xf32>
    "tpu.trace_start"() <{level = 10 : i32, message = "bqd,bkd->bqk"}> : () -> ()
    %cst_37 = arith.constant dense<0.000000e+00> : vector<2x8x8xf32>
    %85 = tpu.matmul %83, %84, %cst_37 {dimension_numbers = #tpu.dot_dimension_numbers<[2], [2], [1], [1], [0, 0, 0, 1, 1, 1], [0], [0]>} : vector<2x8x8xf32>, vector<2x8x8xf32>, vector<2x8x8xf32> -> vector<2x8x8xf32>
    "tpu.trace_stop"() : () -> ()
    %cst_38 = arith.constant 0.353553385 : f32
    %86 = vector.broadcast %cst_38 : f32 to vector<2x8x8xf32>
    %87 = arith.mulf %85, %86 : vector<2x8x8xf32>
    %cst_39 = arith.constant 0.000000e+00 : f32
    %88 = vector.broadcast %cst_39 : f32 to vector<2x8x8xf32>
    %89 = arith.cmpf oeq, %26, %88 : vector<2x8x8xf32>
    %cst_40 = arith.constant -1.000000e+09 : f32
    %90 = vector.broadcast %cst_40 : f32 to vector<2x8x8xf32>
    %91 = arith.select %89, %90, %87 : vector<2x8x8xi1>, vector<2x8x8xf32>
    %cst_41 = arith.constant dense<0xFF800000> : vector<2x8xf32>
    %92 = vector.multi_reduction <maximumf>, %91, %cst_41 [2] : vector<2x8x8xf32> to vector<2x8xf32>
    %93 = vector.shape_cast %92 : vector<2x8xf32> to vector<2x8x1xf32>
    %94 = vector.broadcast %93 : vector<2x8x1xf32> to vector<2x8x8xf32>
    %95 = arith.subf %91, %94 : vector<2x8x8xf32>
    %96 = math.exp %95 : vector<2x8x8xf32>
    %cst_42 = arith.constant dense<0.000000e+00> : vector<2x8xf32>
    %97 = vector.multi_reduction <add>, %96, %cst_42 [2] : vector<2x8x8xf32> to vector<2x8xf32>
    %98 = vector.shape_cast %97 : vector<2x8xf32> to vector<2x8x1xf32>
    %99 = tpu.reciprocal %98 {approx = true} : vector<2x8x1xf32> -> vector<2x8x1xf32>
    %100 = vector.broadcast %99 : vector<2x8x1xf32> to vector<2x8x8xf32>
    %101 = arith.mulf %96, %100 : vector<2x8x8xf32>
    %102 = vector.extract_strided_slice %40 {offsets = [0, 0, 16], sizes = [2, 8, 8], strides = [1, 1, 1]} : vector<2x8x32xf32> to vector<2x8x8xf32>
    "tpu.trace_start"() <{level = 10 : i32, message = "bqk,bkd->bqd"}> : () -> ()
    %cst_43 = arith.constant dense<0.000000e+00> : vector<2x8x8xf32>
    %103 = tpu.matmul %101, %102, %cst_43 {dimension_numbers = #tpu.dot_dimension_numbers<[2], [1], [1], [2], [0, 0, 0, 1, 1, 2], [0], [0]>} : vector<2x8x8xf32>, vector<2x8x8xf32>, vector<2x8x8xf32> -> vector<2x8x8xf32>
    "tpu.trace_stop"() : () -> ()
    %104 = vector.extract_strided_slice %38 {offsets = [0, 0, 24], sizes = [2, 8, 8], strides = [1, 1, 1]} : vector<2x8x32xf32> to vector<2x8x8xf32>
    %105 = vector.extract_strided_slice %39 {offsets = [0, 0, 24], sizes = [2, 8, 8], strides = [1, 1, 1]} : vector<2x8x32xf32> to vector<2x8x8xf32>
    "tpu.trace_start"() <{level = 10 : i32, message = "bqd,bkd->bqk"}> : () -> ()
    %cst_44 = arith.constant dense<0.000000e+00> : vector<2x8x8xf32>
    %106 = tpu.matmul %104, %105, %cst_44 {dimension_numbers = #tpu.dot_dimension_numbers<[2], [2], [1], [1], [0, 0, 0, 1, 1, 1], [0], [0]>} : vector<2x8x8xf32>, vector<2x8x8xf32>, vector<2x8x8xf32> -> vector<2x8x8xf32>
    "tpu.trace_stop"() : () -> ()
    %cst_45 = arith.constant 0.353553385 : f32
    %107 = vector.broadcast %cst_45 : f32 to vector<2x8x8xf32>
    %108 = arith.mulf %106, %107 : vector<2x8x8xf32>
    %cst_46 = arith.constant 0.000000e+00 : f32
    %109 = vector.broadcast %cst_46 : f32 to vector<2x8x8xf32>
    %110 = arith.cmpf oeq, %26, %109 : vector<2x8x8xf32>
    %cst_47 = arith.constant -1.000000e+09 : f32
    %111 = vector.broadcast %cst_47 : f32 to vector<2x8x8xf32>
    %112 = arith.select %110, %111, %108 : vector<2x8x8xi1>, vector<2x8x8xf32>
    %cst_48 = arith.constant dense<0xFF800000> : vector<2x8xf32>
    %113 = vector.multi_reduction <maximumf>, %112, %cst_48 [2] : vector<2x8x8xf32> to vector<2x8xf32>
    %114 = vector.shape_cast %113 : vector<2x8xf32> to vector<2x8x1xf32>
    %115 = vector.broadcast %114 : vector<2x8x1xf32> to vector<2x8x8xf32>
    %116 = arith.subf %112, %115 : vector<2x8x8xf32>
    %117 = math.exp %116 : vector<2x8x8xf32>
    %cst_49 = arith.constant dense<0.000000e+00> : vector<2x8xf32>
    %118 = vector.multi_reduction <add>, %117, %cst_49 [2] : vector<2x8x8xf32> to vector<2x8xf32>
    %119 = vector.shape_cast %118 : vector<2x8xf32> to vector<2x8x1xf32>
    %120 = tpu.reciprocal %119 {approx = true} : vector<2x8x1xf32> -> vector<2x8x1xf32>
    %121 = vector.broadcast %120 : vector<2x8x1xf32> to vector<2x8x8xf32>
    %122 = arith.mulf %117, %121 : vector<2x8x8xf32>
    %123 = vector.extract_strided_slice %40 {offsets = [0, 0, 24], sizes = [2, 8, 8], strides = [1, 1, 1]} : vector<2x8x32xf32> to vector<2x8x8xf32>
    "tpu.trace_start"() <{level = 10 : i32, message = "bqk,bkd->bqd"}> : () -> ()
    %cst_50 = arith.constant dense<0.000000e+00> : vector<2x8x8xf32>
    %124 = tpu.matmul %122, %123, %cst_50 {dimension_numbers = #tpu.dot_dimension_numbers<[2], [1], [1], [2], [0, 0, 0, 1, 1, 2], [0], [0]>} : vector<2x8x8xf32>, vector<2x8x8xf32>, vector<2x8x8xf32> -> vector<2x8x8xf32>
    "tpu.trace_stop"() : () -> ()
    %125 = tpu.concatenate %61, %82, %103, %124 in 2 : vector<2x8x8xf32>, vector<2x8x8xf32>, vector<2x8x8xf32>, vector<2x8x8xf32> -> vector<2x8x32xf32>
    %126 = vector.shape_cast %125 : vector<2x8x32xf32> to vector<16x32xf32>
    %c0_51 = arith.constant 0 : index
    %c0_52 = arith.constant 0 : index
    %127 = vector.load %arg6[%c0_51, %c0_52] : memref<33x32xf32, #tpu.memory_space<vmem>>, vector<32x32xf32>
    %c32_53 = arith.constant 32 : index
    %c0_54 = arith.constant 0 : index
    %128 = vector.load %arg6[%c32_53, %c0_54] : memref<33x32xf32, #tpu.memory_space<vmem>>, vector<1x32xf32>
    %cst_55 = arith.constant dense<0.000000e+00> : vector<16x32xf32>
    %129 = tpu.matmul %126, %127, %cst_55 {dimension_numbers = #tpu.dot_dimension_numbers<[1], [0], [0], [1], [0, 0, 1, 1], [], []>} : vector<16x32xf32>, vector<32x32xf32>, vector<16x32xf32> -> vector<16x32xf32>
    %130 = vector.broadcast %128 : vector<1x32xf32> to vector<16x32xf32>
    %131 = arith.addf %129, %130 : vector<16x32xf32>
    %c0_56 = arith.constant 0 : index
    %c0_57 = arith.constant 0 : index
    %132 = vector.load %arg5[%c0_56, %c0_57] : memref<33x96xf32, #tpu.memory_space<vmem>>, vector<32x96xf32>
    %c32_58 = arith.constant 32 : index
    %c0_59 = arith.constant 0 : index
    %133 = vector.load %arg5[%c32_58, %c0_59] : memref<33x96xf32, #tpu.memory_space<vmem>>, vector<1x96xf32>
    %cst_60 = arith.constant dense<0.000000e+00> : vector<16x96xf32>
    %134 = tpu.matmul %1, %132, %cst_60 {dimension_numbers = #tpu.dot_dimension_numbers<[1], [0], [0], [1], [0, 0, 1, 1], [], []>} : vector<16x32xf32>, vector<32x96xf32>, vector<16x96xf32> -> vector<16x96xf32>
    %135 = vector.broadcast %133 : vector<1x96xf32> to vector<16x96xf32>
    %136 = arith.addf %134, %135 : vector<16x96xf32>
    %137 = vector.shape_cast %136 : vector<16x96xf32> to vector<2x8x96xf32>
    %138 = vector.extract_strided_slice %137 {offsets = [0, 0, 0], sizes = [2, 8, 32], strides = [1, 1, 1]} : vector<2x8x96xf32> to vector<2x8x32xf32>
    %139 = vector.extract_strided_slice %137 {offsets = [0, 0, 32], sizes = [2, 8, 32], strides = [1, 1, 1]} : vector<2x8x96xf32> to vector<2x8x32xf32>
    %140 = vector.extract_strided_slice %137 {offsets = [0, 0, 64], sizes = [2, 8, 32], strides = [1, 1, 1]} : vector<2x8x96xf32> to vector<2x8x32xf32>
    %141 = vector.extract_strided_slice %138 {offsets = [0, 0, 0], sizes = [2, 8, 8], strides = [1, 1, 1]} : vector<2x8x32xf32> to vector<2x8x8xf32>
    %142 = vector.extract_strided_slice %139 {offsets = [0, 0, 0], sizes = [2, 8, 8], strides = [1, 1, 1]} : vector<2x8x32xf32> to vector<2x8x8xf32>
    "tpu.trace_start"() <{level = 10 : i32, message = "bqd,bkd->bqk"}> : () -> ()
    %cst_61 = arith.constant dense<0.000000e+00> : vector<2x8x8xf32>
    %143 = tpu.matmul %141, %142, %cst_61 {dimension_numbers = #tpu.dot_dimension_numbers<[2], [2], [1], [1], [0, 0, 0, 1, 1, 1], [0], [0]>} : vector<2x8x8xf32>, vector<2x8x8xf32>, vector<2x8x8xf32> -> vector<2x8x8xf32>
    "tpu.trace_stop"() : () -> ()
    %cst_62 = arith.constant 0.353553385 : f32
    %144 = vector.broadcast %cst_62 : f32 to vector<2x8x8xf32>
    %145 = arith.mulf %143, %144 : vector<2x8x8xf32>
    %cst_63 = arith.constant 0.000000e+00 : f32
    %146 = vector.broadcast %cst_63 : f32 to vector<2x8x8xf32>
    %147 = arith.cmpf oeq, %31, %146 : vector<2x8x8xf32>
    %cst_64 = arith.constant -1.000000e+09 : f32
    %148 = vector.broadcast %cst_64 : f32 to vector<2x8x8xf32>
    %149 = arith.select %147, %148, %145 : vector<2x8x8xi1>, vector<2x8x8xf32>
    %cst_65 = arith.constant dense<0xFF800000> : vector<2x8xf32>
    %150 = vector.multi_reduction <maximumf>, %149, %cst_65 [2] : vector<2x8x8xf32> to vector<2x8xf32>
    %151 = vector.shape_cast %150 : vector<2x8xf32> to vector<2x8x1xf32>
    %152 = vector.broadcast %151 : vector<2x8x1xf32> to vector<2x8x8xf32>
    %153 = arith.subf %149, %152 : vector<2x8x8xf32>
    %154 = math.exp %153 : vector<2x8x8xf32>
    %cst_66 = arith.constant dense<0.000000e+00> : vector<2x8xf32>
    %155 = vector.multi_reduction <add>, %154, %cst_66 [2] : vector<2x8x8xf32> to vector<2x8xf32>
    %156 = vector.shape_cast %155 : vector<2x8xf32> to vector<2x8x1xf32>
    %157 = tpu.reciprocal %156 {approx = true} : vector<2x8x1xf32> -> vector<2x8x1xf32>
    %158 = vector.broadcast %157 : vector<2x8x1xf32> to vector<2x8x8xf32>
    %159 = arith.mulf %154, %158 : vector<2x8x8xf32>
    %160 = vector.extract_strided_slice %140 {offsets = [0, 0, 0], sizes = [2, 8, 8], strides = [1, 1, 1]} : vector<2x8x32xf32> to vector<2x8x8xf32>
    "tpu.trace_start"() <{level = 10 : i32, message = "bqk,bkd->bqd"}> : () -> ()
    %cst_67 = arith.constant dense<0.000000e+00> : vector<2x8x8xf32>
    %161 = tpu.matmul %159, %160, %cst_67 {dimension_numbers = #tpu.dot_dimension_numbers<[2], [1], [1], [2], [0, 0, 0, 1, 1, 2], [0], [0]>} : vector<2x8x8xf32>, vector<2x8x8xf32>, vector<2x8x8xf32> -> vector<2x8x8xf32>
    "tpu.trace_stop"() : () -> ()
    %162 = vector.extract_strided_slice %138 {offsets = [0, 0, 8], sizes = [2, 8, 8], strides = [1, 1, 1]} : vector<2x8x32xf32> to vector<2x8x8xf32>
    %163 = vector.extract_strided_slice %139 {offsets = [0, 0, 8], sizes = [2, 8, 8], strides = [1, 1, 1]} : vector<2x8x32xf32> to vector<2x8x8xf32>
    "tpu.trace_start"() <{level = 10 : i32, message = "bqd,bkd->bqk"}> : () -> ()
    %cst_68 = arith.constant dense<0.000000e+00> : vector<2x8x8xf32>
    %164 = tpu.matmul %162, %163, %cst_68 {dimension_numbers = #tpu.dot_dimension_numbers<[2], [2], [1], [1], [0, 0, 0, 1, 1, 1], [0], [0]>} : vector<2x8x8xf32>, vector<2x8x8xf32>, vector<2x8x8xf32> -> vector<2x8x8xf32>
    "tpu.trace_stop"() : () -> ()
    %cst_69 = arith.constant 0.353553385 : f32
    %165 = vector.broadcast %cst_69 : f32 to vector<2x8x8xf32>
    %166 = arith.mulf %164, %165 : vector<2x8x8xf32>
    %cst_70 = arith.constant 0.000000e+00 : f32
    %167 = vector.broadcast %cst_70 : f32 to vector<2x8x8xf32>
    %168 = arith.cmpf oeq, %31, %167 : vector<2x8x8xf32>
    %cst_71 = arith.constant -1.000000e+09 : f32
    %169 = vector.broadcast %cst_71 : f32 to vector<2x8x8xf32>
    %170 = arith.select %168, %169, %166 : vector<2x8x8xi1>, vector<2x8x8xf32>
    %cst_72 = arith.constant dense<0xFF800000> : vector<2x8xf32>
    %171 = vector.multi_reduction <maximumf>, %170, %cst_72 [2] : vector<2x8x8xf32> to vector<2x8xf32>
    %172 = vector.shape_cast %171 : vector<2x8xf32> to vector<2x8x1xf32>
    %173 = vector.broadcast %172 : vector<2x8x1xf32> to vector<2x8x8xf32>
    %174 = arith.subf %170, %173 : vector<2x8x8xf32>
    %175 = math.exp %174 : vector<2x8x8xf32>
    %cst_73 = arith.constant dense<0.000000e+00> : vector<2x8xf32>
    %176 = vector.multi_reduction <add>, %175, %cst_73 [2] : vector<2x8x8xf32> to vector<2x8xf32>
    %177 = vector.shape_cast %176 : vector<2x8xf32> to vector<2x8x1xf32>
    %178 = tpu.reciprocal %177 {approx = true} : vector<2x8x1xf32> -> vector<2x8x1xf32>
    %179 = vector.broadcast %178 : vector<2x8x1xf32> to vector<2x8x8xf32>
    %180 = arith.mulf %175, %179 : vector<2x8x8xf32>
    %181 = vector.extract_strided_slice %140 {offsets = [0, 0, 8], sizes = [2, 8, 8], strides = [1, 1, 1]} : vector<2x8x32xf32> to vector<2x8x8xf32>
    "tpu.trace_start"() <{level = 10 : i32, message = "bqk,bkd->bqd"}> : () -> ()
    %cst_74 = arith.constant dense<0.000000e+00> : vector<2x8x8xf32>
    %182 = tpu.matmul %180, %181, %cst_74 {dimension_numbers = #tpu.dot_dimension_numbers<[2], [1], [1], [2], [0, 0, 0, 1, 1, 2], [0], [0]>} : vector<2x8x8xf32>, vector<2x8x8xf32>, vector<2x8x8xf32> -> vector<2x8x8xf32>
    "tpu.trace_stop"() : () -> ()
    %183 = vector.extract_strided_slice %138 {offsets = [0, 0, 16], sizes = [2, 8, 8], strides = [1, 1, 1]} : vector<2x8x32xf32> to vector<2x8x8xf32>
    %184 = vector.extract_strided_slice %139 {offsets = [0, 0, 16], sizes = [2, 8, 8], strides = [1, 1, 1]} : vector<2x8x32xf32> to vector<2x8x8xf32>
    "tpu.trace_start"() <{level = 10 : i32, message = "bqd,bkd->bqk"}> : () -> ()
    %cst_75 = arith.constant dense<0.000000e+00> : vector<2x8x8xf32>
    %185 = tpu.matmul %183, %184, %cst_75 {dimension_numbers = #tpu.dot_dimension_numbers<[2], [2], [1], [1], [0, 0, 0, 1, 1, 1], [0], [0]>} : vector<2x8x8xf32>, vector<2x8x8xf32>, vector<2x8x8xf32> -> vector<2x8x8xf32>
    "tpu.trace_stop"() : () -> ()
    %cst_76 = arith.constant 0.353553385 : f32
    %186 = vector.broadcast %cst_76 : f32 to vector<2x8x8xf32>
    %187 = arith.mulf %185, %186 : vector<2x8x8xf32>
    %cst_77 = arith.constant 0.000000e+00 : f32
    %188 = vector.broadcast %cst_77 : f32 to vector<2x8x8xf32>
    %189 = arith.cmpf oeq, %31, %188 : vector<2x8x8xf32>
    %cst_78 = arith.constant -1.000000e+09 : f32
    %190 = vector.broadcast %cst_78 : f32 to vector<2x8x8xf32>
    %191 = arith.select %189, %190, %187 : vector<2x8x8xi1>, vector<2x8x8xf32>
    %cst_79 = arith.constant dense<0xFF800000> : vector<2x8xf32>
    %192 = vector.multi_reduction <maximumf>, %191, %cst_79 [2] : vector<2x8x8xf32> to vector<2x8xf32>
    %193 = vector.shape_cast %192 : vector<2x8xf32> to vector<2x8x1xf32>
    %194 = vector.broadcast %193 : vector<2x8x1xf32> to vector<2x8x8xf32>
    %195 = arith.subf %191, %194 : vector<2x8x8xf32>
    %196 = math.exp %195 : vector<2x8x8xf32>
    %cst_80 = arith.constant dense<0.000000e+00> : vector<2x8xf32>
    %197 = vector.multi_reduction <add>, %196, %cst_80 [2] : vector<2x8x8xf32> to vector<2x8xf32>
    %198 = vector.shape_cast %197 : vector<2x8xf32> to vector<2x8x1xf32>
    %199 = tpu.reciprocal %198 {approx = true} : vector<2x8x1xf32> -> vector<2x8x1xf32>
    %200 = vector.broadcast %199 : vector<2x8x1xf32> to vector<2x8x8xf32>
    %201 = arith.mulf %196, %200 : vector<2x8x8xf32>
    %202 = vector.extract_strided_slice %140 {offsets = [0, 0, 16], sizes = [2, 8, 8], strides = [1, 1, 1]} : vector<2x8x32xf32> to vector<2x8x8xf32>
    "tpu.trace_start"() <{level = 10 : i32, message = "bqk,bkd->bqd"}> : () -> ()
    %cst_81 = arith.constant dense<0.000000e+00> : vector<2x8x8xf32>
    %203 = tpu.matmul %201, %202, %cst_81 {dimension_numbers = #tpu.dot_dimension_numbers<[2], [1], [1], [2], [0, 0, 0, 1, 1, 2], [0], [0]>} : vector<2x8x8xf32>, vector<2x8x8xf32>, vector<2x8x8xf32> -> vector<2x8x8xf32>
    "tpu.trace_stop"() : () -> ()
    %204 = vector.extract_strided_slice %138 {offsets = [0, 0, 24], sizes = [2, 8, 8], strides = [1, 1, 1]} : vector<2x8x32xf32> to vector<2x8x8xf32>
    %205 = vector.extract_strided_slice %139 {offsets = [0, 0, 24], sizes = [2, 8, 8], strides = [1, 1, 1]} : vector<2x8x32xf32> to vector<2x8x8xf32>
    "tpu.trace_start"() <{level = 10 : i32, message = "bqd,bkd->bqk"}> : () -> ()
    %cst_82 = arith.constant dense<0.000000e+00> : vector<2x8x8xf32>
    %206 = tpu.matmul %204, %205, %cst_82 {dimension_numbers = #tpu.dot_dimension_numbers<[2], [2], [1], [1], [0, 0, 0, 1, 1, 1], [0], [0]>} : vector<2x8x8xf32>, vector<2x8x8xf32>, vector<2x8x8xf32> -> vector<2x8x8xf32>
    "tpu.trace_stop"() : () -> ()
    %cst_83 = arith.constant 0.353553385 : f32
    %207 = vector.broadcast %cst_83 : f32 to vector<2x8x8xf32>
    %208 = arith.mulf %206, %207 : vector<2x8x8xf32>
    %cst_84 = arith.constant 0.000000e+00 : f32
    %209 = vector.broadcast %cst_84 : f32 to vector<2x8x8xf32>
    %210 = arith.cmpf oeq, %31, %209 : vector<2x8x8xf32>
    %cst_85 = arith.constant -1.000000e+09 : f32
    %211 = vector.broadcast %cst_85 : f32 to vector<2x8x8xf32>
    %212 = arith.select %210, %211, %208 : vector<2x8x8xi1>, vector<2x8x8xf32>
    %cst_86 = arith.constant dense<0xFF800000> : vector<2x8xf32>
    %213 = vector.multi_reduction <maximumf>, %212, %cst_86 [2] : vector<2x8x8xf32> to vector<2x8xf32>
    %214 = vector.shape_cast %213 : vector<2x8xf32> to vector<2x8x1xf32>
    %215 = vector.broadcast %214 : vector<2x8x1xf32> to vector<2x8x8xf32>
    %216 = arith.subf %212, %215 : vector<2x8x8xf32>
    %217 = math.exp %216 : vector<2x8x8xf32>
    %cst_87 = arith.constant dense<0.000000e+00> : vector<2x8xf32>
    %218 = vector.multi_reduction <add>, %217, %cst_87 [2] : vector<2x8x8xf32> to vector<2x8xf32>
    %219 = vector.shape_cast %218 : vector<2x8xf32> to vector<2x8x1xf32>
    %220 = tpu.reciprocal %219 {approx = true} : vector<2x8x1xf32> -> vector<2x8x1xf32>
    %221 = vector.broadcast %220 : vector<2x8x1xf32> to vector<2x8x8xf32>
    %222 = arith.mulf %217, %221 : vector<2x8x8xf32>
    %223 = vector.extract_strided_slice %140 {offsets = [0, 0, 24], sizes = [2, 8, 8], strides = [1, 1, 1]} : vector<2x8x32xf32> to vector<2x8x8xf32>
    "tpu.trace_start"() <{level = 10 : i32, message = "bqk,bkd->bqd"}> : () -> ()
    %cst_88 = arith.constant dense<0.000000e+00> : vector<2x8x8xf32>
    %224 = tpu.matmul %222, %223, %cst_88 {dimension_numbers = #tpu.dot_dimension_numbers<[2], [1], [1], [2], [0, 0, 0, 1, 1, 2], [0], [0]>} : vector<2x8x8xf32>, vector<2x8x8xf32>, vector<2x8x8xf32> -> vector<2x8x8xf32>
    "tpu.trace_stop"() : () -> ()
    %225 = tpu.concatenate %161, %182, %203, %224 in 2 : vector<2x8x8xf32>, vector<2x8x8xf32>, vector<2x8x8xf32>, vector<2x8x8xf32> -> vector<2x8x32xf32>
    %226 = vector.shape_cast %225 : vector<2x8x32xf32> to vector<16x32xf32>
    %c0_89 = arith.constant 0 : index
    %c0_90 = arith.constant 0 : index
    %227 = vector.load %arg7[%c0_89, %c0_90] : memref<33x32xf32, #tpu.memory_space<vmem>>, vector<32x32xf32>
    %c32_91 = arith.constant 32 : index
    %c0_92 = arith.constant 0 : index
    %228 = vector.load %arg7[%c32_91, %c0_92] : memref<33x32xf32, #tpu.memory_space<vmem>>, vector<1x32xf32>
    %cst_93 = arith.constant dense<0.000000e+00> : vector<16x32xf32>
    %229 = tpu.matmul %226, %227, %cst_93 {dimension_numbers = #tpu.dot_dimension_numbers<[1], [0], [0], [1], [0, 0, 1, 1], [], []>} : vector<16x32xf32>, vector<32x32xf32>, vector<16x32xf32> -> vector<16x32xf32>
    %230 = vector.broadcast %228 : vector<1x32xf32> to vector<16x32xf32>
    %231 = arith.addf %229, %230 : vector<16x32xf32>
    %c0_94 = arith.constant 0 : index
    %c0_95 = arith.constant 0 : index
    %232 = vector.load %arg8[%c0_94, %c0_95] : memref<33x64xf32, #tpu.memory_space<vmem>>, vector<32x64xf32>
    %c32_96 = arith.constant 32 : index
    %c0_97 = arith.constant 0 : index
    %233 = vector.load %arg8[%c32_96, %c0_97] : memref<33x64xf32, #tpu.memory_space<vmem>>, vector<1x64xf32>
    %cst_98 = arith.constant dense<0.000000e+00> : vector<16x64xf32>
    %234 = tpu.matmul %131, %232, %cst_98 {dimension_numbers = #tpu.dot_dimension_numbers<[1], [0], [0], [1], [0, 0, 1, 1], [], []>} : vector<16x32xf32>, vector<32x64xf32>, vector<16x64xf32> -> vector<16x64xf32>
    %235 = vector.broadcast %233 : vector<1x64xf32> to vector<16x64xf32>
    %236 = arith.addf %234, %235 : vector<16x64xf32>
    %c0_99 = arith.constant 0 : index
    %c0_100 = arith.constant 0 : index
    %237 = vector.load %arg9[%c0_99, %c0_100] : memref<33x64xf32, #tpu.memory_space<vmem>>, vector<32x64xf32>
    %c32_101 = arith.constant 32 : index
    %c0_102 = arith.constant 0 : index
    %238 = vector.load %arg9[%c32_101, %c0_102] : memref<33x64xf32, #tpu.memory_space<vmem>>, vector<1x64xf32>
    %cst_103 = arith.constant dense<0.000000e+00> : vector<16x64xf32>
    %239 = tpu.matmul %231, %237, %cst_103 {dimension_numbers = #tpu.dot_dimension_numbers<[1], [0], [0], [1], [0, 0, 1, 1], [], []>} : vector<16x32xf32>, vector<32x64xf32>, vector<16x64xf32> -> vector<16x64xf32>
    %240 = vector.broadcast %238 : vector<1x64xf32> to vector<16x64xf32>
    %241 = arith.addf %239, %240 : vector<16x64xf32>
    %242 = vector.extract_strided_slice %236 {offsets = [0, 0], sizes = [16, 32], strides = [1, 1]} : vector<16x64xf32> to vector<16x32xf32>
    %243 = vector.extract_strided_slice %236 {offsets = [0, 32], sizes = [16, 32], strides = [1, 1]} : vector<16x64xf32> to vector<16x32xf32>
    %244 = vector.extract_strided_slice %241 {offsets = [0, 0], sizes = [16, 32], strides = [1, 1]} : vector<16x64xf32> to vector<16x32xf32>
    %245 = vector.extract_strided_slice %241 {offsets = [0, 32], sizes = [16, 32], strides = [1, 1]} : vector<16x64xf32> to vector<16x32xf32>
    %246 = arith.maximumf %243, %245 : vector<16x32xf32>
    %247 = arith.subf %243, %246 : vector<16x32xf32>
    %248 = math.exp %247 : vector<16x32xf32>
    %249 = arith.subf %245, %246 : vector<16x32xf32>
    %250 = math.exp %249 : vector<16x32xf32>
    %251 = arith.mulf %242, %248 : vector<16x32xf32>
    %252 = arith.mulf %244, %250 : vector<16x32xf32>
    %253 = arith.addf %251, %252 : vector<16x32xf32>
    %254 = arith.addf %248, %250 : vector<16x32xf32>
    %255 = tpu.reciprocal %254 {approx = true} : vector<16x32xf32> -> vector<16x32xf32>
    %256 = arith.mulf %253, %255 : vector<16x32xf32>
    %257 = vector.shape_cast %256 : vector<16x32xf32> to vector<2x8x32xf32>
    %c0_104 = arith.constant 0 : index
    %c0_105 = arith.constant 0 : index
    %c0_106 = arith.constant 0 : index
    %258 = vector.load %arg11[%c0_104, %c0_105, %c0_106] : memref<2x8x32xf32, #tpu.memory_space<vmem>>, vector<2x8x32xf32>
    tpu.vector_store %arg11[%c0_104, %c0_105, %c0_106], %257 {strides = array<i32>} : memref<2x8x32xf32, #tpu.memory_space<vmem>>, vector<2x8x32xf32>,
    return
  }
  func.func @transform_0(%arg0: i32) -> (i32, i32, i32) {
    %c0_i32 = arith.constant 0 : i32
    %c0_i32_0 = arith.constant 0 : i32
    %c0_i32_1 = arith.constant 0 : i32
    return %arg0, %c0_i32, %c0_i32_0 : i32, i32, i32
  }
  func.func @transform_1(%arg0: i32) -> (i32, i32, i32) {
    %c0_i32 = arith.constant 0 : i32
    %c0_i32_0 = arith.constant 0 : i32
    %c0_i32_1 = arith.constant 0 : i32
    return %arg0, %c0_i32, %c0_i32_0 : i32, i32, i32
  }
  func.func @transform_2(%arg0: i32) -> (i32, i32) {
    %c0_i32 = arith.constant 0 : i32
    %c0_i32_0 = arith.constant 0 : i32
    %c0_i32_1 = arith.constant 0 : i32
    return %c0_i32, %c0_i32_0 : i32, i32
  }
  func.func @transform_3(%arg0: i32) -> (i32, i32) {
    %c0_i32 = arith.constant 0 : i32
    %c0_i32_0 = arith.constant 0 : i32
    %c0_i32_1 = arith.constant 0 : i32
    return %c0_i32, %c0_i32_0 : i32, i32
  }
  func.func @transform_4(%arg0: i32) -> (i32, i32) {
    %c0_i32 = arith.constant 0 : i32
    %c0_i32_0 = arith.constant 0 : i32
    %c0_i32_1 = arith.constant 0 : i32
    return %c0_i32, %c0_i32_0 : i32, i32
  }
  func.func @transform_5(%arg0: i32) -> (i32, i32) {
    %c0_i32 = arith.constant 0 : i32
    %c0_i32_0 = arith.constant 0 : i32
    %c0_i32_1 = arith.constant 0 : i32
    return %c0_i32, %c0_i32_0 : i32, i32
  }
  func.func @transform_6(%arg0: i32) -> (i32, i32) {
    %c0_i32 = arith.constant 0 : i32
    %c0_i32_0 = arith.constant 0 : i32
    %c0_i32_1 = arith.constant 0 : i32
    return %c0_i32, %c0_i32_0 : i32, i32
  }
  func.func @transform_7(%arg0: i32) -> (i32, i32) {
    %c0_i32 = arith.constant 0 : i32
    %c0_i32_0 = arith.constant 0 : i32
    %c0_i32_1 = arith.constant 0 : i32
    return %c0_i32, %c0_i32_0 : i32, i32
  }
  func.func @transform_8(%arg0: i32) -> (i32, i32) {
    %c0_i32 = arith.constant 0 : i32
    %c0_i32_0 = arith.constant 0 : i32
    %c0_i32_1 = arith.constant 0 : i32
    return %c0_i32, %c0_i32_0 : i32, i32
  }
  func.func @transform_9(%arg0: i32) -> (i32, i32) {
    %c0_i32 = arith.constant 0 : i32
    %c0_i32_0 = arith.constant 0 : i32
    %c0_i32_1 = arith.constant 0 : i32
    return %c0_i32, %c0_i32_0 : i32, i32
  }
  func.func @transform_10(%arg0: i32) -> (i32, i32, i32) {
    %c0_i32 = arith.constant 0 : i32
    %c0_i32_0 = arith.constant 0 : i32
    %c0_i32_1 = arith.constant 0 : i32
    return %arg0, %c0_i32, %c0_i32_0 : i32, i32, i32
  }
}

</mosaic_0001>

<bundles_post_ra>
// kernel: tpu_custom_call.1
= control target key start
LH: loop header
LB: loop body
LE: loop exit
PB: predicated region body
PF: predicated region fallthrough
CT: control target
= control target key end

     0   :  { %16 = vsyncpa [#allocation4], 0  ;;  %s4918_s0 = inlined_call_operand.hbm [shape: f32[2,8,32], index: 0, kind: input, shape index: {}]   ;;  %s4919_s1 = inlined_call_operand.hbm [shape: f32[2,8,8], index: 1, kind: input, shape index: {}]   ;;  %s4920_s2 = inlined_call_operand.vmem [shape: f32[33,64], index: 2, kind: input, shape index: {}]   ;;  %s4921_s3 = inlined_call_operand.vmem [shape: f32[33,96], index: 3, kind: input, shape index: {}]   ;;  %s4922_s4 = inlined_call_operand.vmem [shape: f32[33,96], index: 4, kind: input, shape index: {}]   ;;  %s4923_s5 = inlined_call_operand.vmem [shape: f32[33,32], index: 5, kind: input, shape index: {}]   ;;  %s4924_s6 = inlined_call_operand.vmem [shape: f32[33,32], index: 6, kind: input, shape index: {}]   ;;  %s4925_s7 = inlined_call_operand.hbm [shape: f32[33,64], index: 7, kind: input, shape index: {}]   ;;  %s4926_s8 = inlined_call_operand.vmem [shape: f32[33,64], index: 8, kind: input, shape index: {}]   ;;  %s4927_s9 = inlined_call_operand.<no memory space> [shape: f32[1,1], index: 9, kind: input, shape index: {}]   ;;  %s4928_s10 = inlined_call_operand.hbm [shape: f32[2,8,32], index: 10, kind: output, shape index: {}]  }
   0x1   :  { %17 = vsyncpa [#allocation7], 0 }
   0x2   :  { %18 = vsyncpa [#allocation5], 0  ;;  %s4307_s13 = smov [#allocation6]   ;;  %s4308_s15 = smov [#allocation3]  }
   0x3   :  { %s36_s14 = sshll.u32 %s4307_s13, 4  ;;  %s24_s16 = sshll.u32 %s4308_s15, 4  ;;  %s37_s14 = int_to_ptr.vmem [resolvable:$true] %s36_s14  ;;  %s25_s16 = int_to_ptr.vmem [resolvable:$true] %s24_s16 }
   0x4   :  { %s4229_s17 = scalar_lea.vmem %s37_s14, 256  ;;  %p4234_p1 = scmp.lt.s32.totalorder %s37_s14, %s37_s14 }
   0x5   :  { %p4230_p0 = scmp.ne.s32.totalorder %s37_s14, %s4229_s17  ;;  %p4235_p2 = scmp.lt.s32.totalorder %s4229_s17, %s4229_s17 }
   0x7   :  { %p4236_p3 = por %p4235_p2, %p4234_p1 }
   0x9   :  { %p4237_p4 = pnand %p4236_p3, %p4230_p0 }
   0xb   :  { %4240 = shalt.err (!%p4237_p4)
}
   0xc   :  { %s4309_s18 = smov 128   ;;  %s4310_s19 = smov 8  }
   0xd   :  { %42 = dma.hbm_to_vmem [thread:$0]  %s4919_s1, 256, %s37_s14, [#allocation7], %s4309_s18, %s4309_s18, %s4310_s19  }
   0xe   :  { %s4249_s22 = scalar_lea.vmem %s25_s16, 256  ;;  %p4254_p6 = scmp.lt.s32.totalorder %s25_s16, %s25_s16 }
   0xf   :  { %p4250_p5 = scmp.ne.s32.totalorder %s25_s16, %s4249_s22  ;;  %p4255_p7 = scmp.lt.s32.totalorder %s4249_s22, %s4249_s22 }
  0x11   :  { %p4256_p8 = por %p4255_p7, %p4254_p6 }
  0x13   :  { %p4257_p9 = pnand %p4256_p8, %p4250_p5 }
  0x15   :  { %4260 = shalt.err (!%p4257_p9)
}
  0x16   :  { %30 = dma.hbm_to_vmem [thread:$0]  %s4918_s0, 256, %s25_s16, [#allocation4], %s4309_s18, %s4309_s18, %s4310_s19  }
  0x17   :  { %s4311_s25 = smov [#allocation8]  }
  0x18   :  { %s58_s26 = sshll.u32 %s4311_s25, 4  ;;  %s59_s26 = int_to_ptr.vmem [resolvable:$true] %s58_s26 }
  0x19   :  { %s4269_s27 = scalar_lea.vmem %s59_s26, 640  ;;  %p4274_p11 = scmp.lt.s32.totalorder %s59_s26, %s59_s26 }
  0x1a   :  { %p4270_p10 = scmp.ne.s32.totalorder %s59_s26, %s4269_s27  ;;  %p4275_p12 = scmp.lt.s32.totalorder %s4269_s27, %s4269_s27 }
  0x1c   :  { %p4276_p13 = por %p4275_p12, %p4274_p11 }
  0x1e   :  { %p4277_p0 = pnand %p4276_p13, %p4270_p10 }
  0x20   :  { %4280 = shalt.err (!%p4277_p0)
}
  0x21   :  { %64 = dma.hbm_to_vmem [thread:$0]  %s4925_s7, 640, %s59_s26, [#allocation7], %s4309_s18, %s4309_s18, %s4310_s19  }
  0x22   :  { %4301 = dma.done.wait [#allocation4], 256  }
  0x23   :  { %4302 = vsyncadd [#allocation4], 4294967040 }
  0x24   :  { %4303 = dma.done.wait [#allocation7], 896  }
  0x25   :  { %4304 = vsyncadd [#allocation7], 4294966400  ;;  %vm91_vm0 = vcmask 261120   ;;  %v85_v0 = vld [vmem:[%s4920_s2 + $0x18] sm:$0xff]  ;;  %v84_v1 = vld [vmem:[%s4920_s2 + $0x10] sm:$0xff]  ;;  %v4312_v10 = vmov 0.0   ;;  %v174_v25 = vstv %s4927_s9 }
  0x26   :  { %3869 = vmatprep.subr.mxu0 %v85_v0  ;;  %v4407_v2 = vld [vmem:[#allocation3] sm:$0xff]  ;;  %v83_v3 = vld [vmem:[%s4920_s2 + $0x8] sm:$0xff]  ;;  %v356_v6 = vld [vmem:[%s4921_s3 + $0x18] sm:$0xff]  ;;  %3880 = vmatprep.subr.mxu1 %v4312_v10  ;;  %vm4313_vm1 = vmmov 0   ;;  %s4314_s27 = smov 96   ;;  %vm440_vm2 = vcmask 64512  }
  0x27   :  { %3870 = vmatpush3.msra.mxu0 %v85_v0  ;;  %3877 = vmatprep.mubr.msk.f32.mxu0 %vm91_vm0, %v4407_v2  ;;  %v82_v4 = vld [vmem:[%s4920_s2] sm:$0xff]  ;;  %v4417_v5 = vld [vmem:[#allocation3 + $0x8] sm:$0xff]  ;;  %v355_v7 = vld [vmem:[%s4921_s3 + $0x10] sm:$0xff]  ;;  %s4315_s9 = smov 64   ;;  %s4316_s0 = smov 88   ;;  %vm1800_vm9 = vcmask 130048  }
  0x28   :  { %3871 = vmatprep.subr.mxu0 %v84_v1  ;;  %v354_v8 = vld [vmem:[%s4921_s3 + $0x8] sm:$0xff]  ;;  %v353_v9 = vld [vmem:[%s4921_s3] sm:$0xff]  ;;  %3882 = vmatprep.mubr.msk.f32.mxu1 %vm4313_vm1, %v4312_v10  ;;  %v80_v45 = vld [vmem:[#allocation6] sm:$0xff]  ;;  %s4317_s29 = smov 120   ;;  %s4318_s30 = smov 56   ;;  %vm1803_vm10 = vcmask 195584  }
  0x29   :  { %3872 = vmatpush3.msra.mxu0 %v84_v1  ;;  %v3686_v12 = vld [vmem:[%s4920_s2 + $0x20] ss:$0 sm:$0xff]  ;;  %v81_v52 = vld [vmem:[#allocation6 + $0x8] sm:$0xff]  ;;  %s4319_s11 = smov 112   ;;  %s4320_s12 = smov 80  }
  0x2a   :  { %3873 = vmatprep.subr.mxu0 %v83_v3  ;;  %v3693_v17 = vld [vmem:[%s4921_s3 + $0x20] ss:$0 sm:$0xff]  ;;  %s4321_s13 = smov 48   ;;  %s4322_s7 = smov 104  }
  0x2b   :  { %3874 = vmatpush3.msra.mxu0 %v83_v3  ;;  %s4323_s14 = smov 72   ;;  %s4324_s15 = smov 40  }
  0x2c   :  { %3875 = vmatprep.subr.mxu0 %v82_v4  ;;  %s4325_s16 = smov 16   ;;  %s4326_s23 = smov 24  }
  0x2d   :  { %3876 = vmatpush3.msra.mxu0 %v82_v4 }
  0x2e   :  { %3878 = vmatmul.mubr.msk.f32.vlgmr.msra.gmra.mxu0 %vm91_vm0, %v4417_v5  ;;  %3890 = vmatprep.subr.mxu0 %v356_v6 }
  0x2f   :  { %3891 = vmatpush3.msra.mxu0 %v356_v6  ;;  %3898 = vmatprep.mubr.msk.f32.mxu0 %vm91_vm0, %v4407_v2 }
  0x30   :  { %3892 = vmatprep.subr.mxu0 %v355_v7 }
  0x31   :  { %3893 = vmatpush3.msra.mxu0 %v355_v7 }
  0x32   :  { %3894 = vmatprep.subr.mxu0 %v354_v8 }
  0x33   :  { %3895 = vmatpush3.msra.mxu0 %v354_v8 }
  0x34   :  { %3896 = vmatprep.subr.mxu0 %v353_v9 }
  0x35   :  { %3897 = vmatpush3.msra.mxu0 %v353_v9 }
  0x36   :  { %3899 = vmatmul.mubr.msk.f32.vlgmr.msra.gmra.mxu0 %vm91_vm0, %v4417_v5  ;;  %3921 = vmatprep.subr.mxu0 %v4312_v10 }
  0x37   :  { %3923 = vmatprep.mubr.msk.f32.mxu0 %vm4313_vm1, %v4312_v10 }
  0xee   :  { %v3879_v11 = vpop.f32.mrf.mxu0 }
  0xef   :  { %v170_v15 = vadd.f32 %v3879_v11, %v3686_v12 }
  0xf0   :  { %v164_v13 = vpop.f32.mrf.mxu0 }
  0xf1   :  { %v165_v14 = vadd.f32 %v3686_v12, %v164_v13 }
  0xf3   :  { %176 = vrot.lane.b32.xlu0 %v165_v14, %s4314_s27 }
  0xf6   :  { %v3900_v16 = vpop.f32.mrf.mxu0 }
  0xf7   :  { %253 = vrot.lane.b32.xlu0 %v170_v15, %s4314_s27  ;;  %v4453_v20 = vadd.f32 %v3900_v16, %v3693_v17 }
  0xf8   :  { %v428_v18 = vpop.f32.mrf.mxu0 }
  0xf9   :  { %v4451_v19 = vadd.f32 %v3693_v17, %v428_v18 }
  0xfb   :  { %438 = vrot.lane.b32.xlu1 %v4451_v19, %s4314_s27 }
  0xff   :  { %516 = vrot.lane.b32.xlu1 %v4453_v20, %s4314_s27 }
 0x165   :  { %v177_v21 = vpop.permute.xlu0 %176 }
 0x166   :  { %3881 = vmatpush3.xpose.msk.msra.mxu1 %vm91_vm0, %v177_v21 }
 0x167   :  { %3885 = vmatprep.subr.mxu1 %v4312_v10 }
 0x169   :  { %3883 = vmatmul.mubr.msk.f32.vlgmr.msra.gmra.mxu1 %vm91_vm0, %v165_v14  ;;  %v254_v22 = vpop.permute.xlu0 %253 }
 0x16a   :  { %3886 = vmatpush3.xpose.msk.msra.mxu1 %vm91_vm0, %v254_v22  ;;  %3887 = vmatprep.mubr.msk.f32.mxu1 %vm4313_vm1, %v4312_v10 }
 0x16b   :  { %3901 = vmatprep.subr.mxu1 %v4312_v10 }
 0x16d   :  { %v439_v23 = vpop.permute.xlu1 %438  ;;  %3888 = vmatmul.mubr.msk.f32.vlgmr.msra.gmra.mxu1 %vm91_vm0, %v170_v15 }
 0x16e   :  { %3902 = vmatpush3.xpose.msk.msra.mxu1 %vm440_vm2, %v439_v23  ;;  %3903 = vmatprep.mubr.msk.f32.mxu1 %vm4313_vm1, %v4312_v10 }
 0x16f   :  { %3906 = vmatprep.subr.mxu1 %v4312_v10 }
 0x171   :  { %v517_v24 = vpop.permute.xlu1 %516  ;;  %3904 = vmatmul.mubr.msk.f32.vlgmr.msra.gmra.mxu1 %vm440_vm2, %v4451_v19 }
 0x172   :  { %3907 = vmatpush3.xpose.msk.msra.mxu1 %vm440_vm2, %v517_v24  ;;  %3908 = vmatprep.mubr.msk.f32.mxu1 %vm4313_vm1, %v4312_v10 }
 0x173   :  { %3911 = vmatprep.subr.mxu1 %v4312_v10 }
 0x175   :  { %3909 = vmatmul.mubr.msk.f32.vlgmr.msra.gmra.mxu1 %vm440_vm2, %v4453_v20 }
 0x176   :  { %3913 = vmatprep.mubr.msk.f32.mxu1 %vm4313_vm1, %v4312_v10 }
 0x229   :  { %v248_v26 = vpop.f32.mrf.mxu1 }
 0x22a   :  { %v249_v27 = vadd.f32 %v248_v26, %v174_v25 }
 0x22b   :  { %v3884_v28 = vpop.f32.mrf.mxu1 }
 0x22c   :  { %v329_v29 = vsub.f32 0.0, %v249_v27 }
 0x22d   :  { %v325_v30 = vpop.f32.mrf.mxu1 }
 0x22e   :  { %v331_v31 = vmul.f32 1.442695, %v329_v29  ;;  %v326_v32 = vadd.f32 %v325_v30, %v174_v25 }
 0x22f   :  { %v3889_v33 = vpop.f32.mrf.mxu1 }
 0x230   :  { %4137 = vpow2.f32 %v331_v31  ;;  %v330_v34 = vsub.f32 0.0, %v326_v32 }
 0x231   :  { %v511_v35 = vpop.f32.mrf.mxu1 }
 0x232   :  { %v333_v36 = vmul.f32 1.442695, %v330_v34  ;;  %v592_v51 = vmul.f32 0.35355338, %v511_v35 }
 0x233   :  { %v3905_v37 = vpop.f32.mrf.mxu1 }
 0x234   :  { %4139 = vpow2.f32 %v333_v36 }
 0x235   :  { %v588_v38 = vpop.f32.mrf.mxu1 }
 0x236   :  { %v593_v59 = vmul.f32 0.35355338, %v588_v38 }
 0x237   :  { %v3910_v39 = vpop.f32.mrf.mxu1 }
 0x23d   :  { %v4138_v40 = vpop.eup %4137 }
 0x23e   :  { %v335_v41 = vadd.f32 1.0, %v4138_v40 }
 0x240   :  { %4141 = vrcp.f32 %v335_v41 }
 0x241   :  { %v4140_v42 = vpop.eup %4139 }
 0x242   :  { %v336_v43 = vadd.f32 1.0, %v4140_v42 }
 0x244   :  { %4143 = vrcp.f32 %v336_v43 }
 0x24d   :  { %v4142_v44 = vpop.eup %4141 }
 0x24e   :  { %vm341_vm3 = vcmp.gt.f32.partialorder %v4142_v44, 0.5  ;;  %vm347_vm4 = vcmp.le.f32.partialorder %v4142_v44, 0.5 }
 0x24f   :  { %v343_v46 = vsel %vm341_vm3, %v4142_v44, 0.0  ;;  %v349_v47 = vsel %vm347_vm4, %v4142_v44, 0.0 }
 0x250   :  { %v4484_v48 = vmul.f32 %v343_v46, %v80_v45  ;;  %v4486_v49 = vmul.f32 %v349_v47, %v80_v45 }
 0x251   :  { %v4144_v50 = vpop.eup %4143 }
 0x252   :  { %vm594_vm5 = vcmp.eq.f32.partialorder %v4484_v48, 0.0  ;;  %vm342_vm6 = vcmp.gt.f32.partialorder %v4144_v50, 0.5  ;;  %vm348_vm7 = vcmp.le.f32.partialorder %v4144_v50, 0.5  ;;  %vm2136_vm12 = vcmp.eq.f32.partialorder %v4486_v49, 0.0 }
 0x253   :  { %v596_v53 = vsel %vm594_vm5, -1e+09, %v592_v51  ;;  %v344_v54 = vsel %vm342_vm6, %v4144_v50, 0.0  ;;  %v350_v55 = vsel %vm348_vm7, %v4144_v50, 0.0 }
 0x254   :  { %v598_v56 = vsel %vm440_vm2, %v596_v53, -inf  ;;  %v4492_v57 = vmul.f32 %v344_v54, %v81_v52  ;;  %v4494_v58 = vmul.f32 %v350_v55, %v81_v52 }
 0x255   :  { %599 = vmax.xlane.f32.xlu0 %v598_v56 }
 0x256   :  { %vm595_vm8 = vcmp.eq.f32.partialorder %v4492_v57, 0.0  ;;  %vm2137_vm11 = vcmp.eq.f32.partialorder %v4494_v58, 0.0 }
 0x257   :  { %v597_v60 = vsel %vm595_vm8, -1e+09, %v593_v59 }
 0x258   :  { %v601_v61 = vsel %vm440_vm2, %v597_v60, -inf }
 0x259   :  { %602 = vmax.xlane.f32.xlu1 %v601_v61 }
 0x26a   :  { %620 = vrot.lane.b32.xlu1 %v4451_v19, %s4315_s9 }
 0x26e   :  { %852 = vrot.lane.b32.xlu1 %v4453_v20, %s4316_s0 }
 0x272   :  { %850 = vrot.lane.b32.xlu1 %v4453_v20, %s4317_s29 }
 0x276   :  { %772 = vrot.lane.b32.xlu1 %v4451_v19, %s4317_s29 }
 0x2de   :  { %v600_v62 = vpop.xlane.xlu0 %599 }
 0x2df   :  { %v604_v63 = vsub.f32 %v596_v53, %v600_v62 }
 0x2e1   :  { %v606_v0 = vmul.f32 1.442695, %v604_v63 }
 0x2e2   :  { %v603_v1 = vpop.xlane.xlu1 %602 }
 0x2e3   :  { %4145 = vpow2.f32 %v606_v0  ;;  %v605_v3 = vsub.f32 %v597_v60, %v603_v1 }
 0x2e5   :  { %v608_v4 = vmul.f32 1.442695, %v605_v3 }
 0x2e6   :  { %v621_v6 = vpop.permute.xlu1 %620 }
 0x2e7   :  { %4147 = vpow2.f32 %v608_v4  ;;  %3912 = vmatpush3.msra.mxu1 %v621_v6 }
 0x2e8   :  { %3916 = vmatprep.subr.mxu1 %v4312_v10 }
 0x2ea   :  { %v853_v13 = vpop.permute.xlu1 %852 }
 0x2ee   :  { %v851_v16 = vpop.permute.xlu1 %850 }
 0x2f0   :  { %v4146_v7 = vpop.eup %4145 }
 0x2f1   :  { %v610_v8 = vsel %vm440_vm2, %v4146_v7, 0.0 }
 0x2f2   :  { %611 = vadd.xlane.f32.xlu0 %v610_v8  ;;  %v773_v21 = vpop.permute.xlu1 %772 }
 0x2f4   :  { %v4148_v9 = vpop.eup %4147 }
 0x2f5   :  { %v613_v11 = vsel %vm440_vm2, %v4148_v9, 0.0 }
 0x2f6   :  { %614 = vadd.xlane.f32.xlu0 %v613_v11 }
 0x30c   :  { %696 = vrot.lane.b32.xlu0 %v4453_v20, %s4315_s9 }
 0x310   :  { %774 = vrot.lane.b32.xlu0 %v4451_v19, %s4316_s0 }
 0x37b   :  { %v612_v12 = vpop.xlane.xlu0 %611 }
 0x37c   :  { %4149 = vrcp.f32 %v612_v12 }
 0x37f   :  { %v615_v14 = vpop.xlane.xlu0 %614 }
 0x380   :  { %4151 = vrcp.f32 %v615_v14 }
 0x383   :  { %v697_v15 = vpop.permute.xlu0 %696 }
 0x387   :  { %v775_v17 = vpop.permute.xlu0 %774 }
 0x388   :  { %3922 = vmatpush3.xpose.msk.msra.mxu0 %vm440_vm2, %v775_v17 }
 0x389   :  { %v4150_v18 = vpop.eup %4149  ;;  %3931 = vmatprep.subr.mxu0 %v4312_v10 }
 0x38a   :  { %v618_v22 = vmul.f32 %v4150_v18, %v4146_v7 }
 0x38b   :  { %3924 = vmatmul.mubr.msk.f32.vlgmr.msra.gmra.mxu0 %vm440_vm2, %v773_v21 }
 0x38c   :  { %3914 = vmatmul.mubr.msk.f32.vlgmr.msra.gmra.mxu1 %vm440_vm2, %v618_v22  ;;  %3933 = vmatprep.mubr.msk.f32.mxu0 %vm4313_vm1, %v4312_v10 }
 0x38d   :  { %v4152_v23 = vpop.eup %4151  ;;  %3917 = vmatpush3.msra.mxu1 %v697_v15  ;;  %3918 = vmatprep.mubr.msk.f32.mxu1 %vm4313_vm1, %v4312_v10 }
 0x38e   :  { %3926 = vmatprep.subr.mxu1 %v4312_v10  ;;  %v619_v24 = vmul.f32 %v4152_v23, %v4148_v9 }
 0x390   :  { %3919 = vmatmul.mubr.msk.f32.vlgmr.msra.gmra.mxu1 %vm440_vm2, %v619_v24 }
 0x391   :  { %3927 = vmatpush3.xpose.msk.msra.mxu1 %vm440_vm2, %v853_v13  ;;  %3928 = vmatprep.mubr.msk.f32.mxu1 %vm4313_vm1, %v4312_v10 }
 0x392   :  { %3936 = vmatprep.subr.mxu1 %v4312_v10 }
 0x394   :  { %3929 = vmatmul.mubr.msk.f32.vlgmr.msra.gmra.mxu1 %vm440_vm2, %v851_v16 }
 0x395   :  { %3938 = vmatprep.mubr.msk.f32.mxu1 %vm4313_vm1, %v4312_v10 }
 0x44b   :  { %v846_v25 = vpop.f32.mrf.mxu0 }
 0x44c   :  { %v928_v26 = vmul.f32 0.35355338, %v846_v25  ;;  %v4532_v27 = vpop.f32.mrf.mxu1 }
 0x44d   :  { %v3925_v28 = vpop.f32.mrf.mxu0 }
 0x44e   :  { %v3915_v29 = vpop.f32.mrf.mxu1  ;;  %v930_v30 = vsel %vm594_vm5, -1e+09, %v928_v26 }
 0x44f   :  { %v932_v31 = vsel %vm440_vm2, %v930_v30, -inf }
 0x450   :  { %933 = vmax.xlane.f32.xlu1 %v932_v31  ;;  %v4537_v32 = vpop.f32.mrf.mxu1 }
 0x452   :  { %v3920_v33 = vpop.f32.mrf.mxu1 }
 0x454   :  { %v924_v34 = vpop.f32.mrf.mxu1 }
 0x455   :  { %v929_v35 = vmul.f32 0.35355338, %v924_v34 }
 0x456   :  { %v3930_v36 = vpop.f32.mrf.mxu1 }
 0x457   :  { %v931_v37 = vsel %vm595_vm8, -1e+09, %v929_v35 }
 0x458   :  { %v935_v38 = vsel %vm440_vm2, %v931_v37, -inf }
 0x459   :  { %936 = vmax.xlane.f32.xlu0 %v935_v38 }
 0x461   :  { %1030 = vrot.lane.b32.xlu1 %v4453_v20, %s4318_s30 }
 0x465   :  { %1184 = vrot.lane.b32.xlu1 %v4453_v20, %s4319_s11 }
 0x469   :  { %954 = vrot.lane.b32.xlu1 %v4451_v19, %s4318_s30 }
 0x46d   :  { %1106 = vrot.lane.b32.xlu1 %v4451_v19, %s4319_s11 }
 0x4d9   :  { %v934_v39 = vpop.xlane.xlu1 %933 }
 0x4da   :  { %v938_v40 = vsub.f32 %v930_v30, %v934_v39 }
 0x4dc   :  { %v940_v41 = vmul.f32 1.442695, %v938_v40 }
 0x4dd   :  { %v1031_v42 = vpop.permute.xlu1 %1030 }
 0x4de   :  { %4153 = vpow2.f32 %v940_v41  ;;  %3937 = vmatpush3.msra.mxu1 %v1031_v42 }
 0x4df   :  { %3946 = vmatprep.subr.mxu1 %v4312_v10 }
 0x4e1   :  { %v1185_v43 = vpop.permute.xlu1 %1184 }
 0x4e2   :  { %v937_v44 = vpop.xlane.xlu0 %936 }
 0x4e3   :  { %v939_v45 = vsub.f32 %v931_v37, %v937_v44 }
 0x4e5   :  { %v942_v46 = vmul.f32 1.442695, %v939_v45  ;;  %v955_v47 = vpop.permute.xlu1 %954 }
 0x4e6   :  { %3932 = vmatpush3.msra.mxu0 %v955_v47 }
 0x4e7   :  { %4155 = vpow2.f32 %v942_v46  ;;  %3941 = vmatprep.subr.mxu0 %v4312_v10 }
 0x4e9   :  { %v1107_v62 = vpop.permute.xlu1 %1106 }
 0x4eb   :  { %v4154_v50 = vpop.eup %4153 }
 0x4ec   :  { %v944_v51 = vsel %vm440_vm2, %v4154_v50, 0.0 }
 0x4ed   :  { %945 = vadd.xlane.f32.xlu0 %v944_v51 }
 0x4f4   :  { %v4156_v52 = vpop.eup %4155 }
 0x4f5   :  { %v947_v53 = vsel %vm440_vm2, %v4156_v52, 0.0 }
 0x4f6   :  { %948 = vadd.xlane.f32.xlu0 %v947_v53 }
 0x50c   :  { %1186 = vrot.lane.b32.xlu0 %v4453_v20, %s4320_s12 }
 0x510   :  { %1108 = vrot.lane.b32.xlu0 %v4451_v19, %s4320_s12 }
 0x576   :  { %v946_v54 = vpop.xlane.xlu0 %945 }
 0x577   :  { %4157 = vrcp.f32 %v946_v54 }
 0x57f   :  { %v949_v55 = vpop.xlane.xlu0 %948 }
 0x580   :  { %4159 = vrcp.f32 %v949_v55 }
 0x583   :  { %v1187_v56 = vpop.permute.xlu0 %1186 }
 0x584   :  { %v4158_v59 = vpop.eup %4157 }
 0x585   :  { %v952_v60 = vmul.f32 %v4158_v59, %v4154_v50 }
 0x587   :  { %3934 = vmatmul.mubr.msk.f32.vlgmr.msra.gmra.mxu0 %vm440_vm2, %v952_v60  ;;  %v1109_v61 = vpop.permute.xlu0 %1108 }
 0x588   :  { %3942 = vmatpush3.xpose.msk.msra.mxu0 %vm440_vm2, %v1109_v61  ;;  %3943 = vmatprep.mubr.msk.f32.mxu0 %vm4313_vm1, %v4312_v10 }
 0x589   :  { %3951 = vmatprep.subr.mxu0 %v4312_v10 }
 0x58b   :  { %3944 = vmatmul.mubr.msk.f32.vlgmr.msra.gmra.mxu0 %vm440_vm2, %v1107_v62 }
 0x58c   :  { %3953 = vmatprep.mubr.msk.f32.mxu0 %vm4313_vm1, %v4312_v10 }
 0x58d   :  { %v4160_v63 = vpop.eup %4159 }
 0x58e   :  { %v953_v0 = vmul.f32 %v4160_v63, %v4156_v52 }
 0x590   :  { %3939 = vmatmul.mubr.msk.f32.vlgmr.msra.gmra.mxu1 %vm440_vm2, %v953_v0 }
 0x591   :  { %3947 = vmatpush3.xpose.msk.msra.mxu1 %vm440_vm2, %v1187_v56  ;;  %3948 = vmatprep.mubr.msk.f32.mxu1 %vm4313_vm1, %v4312_v10 }
 0x592   :  { %3956 = vmatprep.subr.mxu1 %v4312_v10 }
 0x594   :  { %3949 = vmatmul.mubr.msk.f32.vlgmr.msra.gmra.mxu1 %vm440_vm2, %v1185_v43 }
 0x595   :  { %3958 = vmatprep.mubr.msk.f32.mxu1 %vm4313_vm1, %v4312_v10 }
 0x647   :  { %v4574_v1 = vpop.f32.mrf.mxu0 }
 0x649   :  { %v3935_v3 = vpop.f32.mrf.mxu0 }
 0x64b   :  { %v1180_v4 = vpop.f32.mrf.mxu0 }
 0x64c   :  { %v1262_v6 = vmul.f32 0.35355338, %v1180_v4 }
 0x64d   :  { %v3945_v7 = vpop.f32.mrf.mxu0 }
 0x64e   :  { %v1264_v8 = vsel %vm594_vm5, -1e+09, %v1262_v6 }
 0x64f   :  { %v1266_v9 = vsel %vm440_vm2, %v1264_v8, -inf }
 0x650   :  { %1267 = vmax.xlane.f32.xlu1 %v1266_v9  ;;  %v4579_v11 = vpop.f32.mrf.mxu1 }
 0x652   :  { %v3940_v12 = vpop.f32.mrf.mxu1 }
 0x654   :  { %v1258_v13 = vpop.f32.mrf.mxu1 }
 0x655   :  { %v1263_v14 = vmul.f32 0.35355338, %v1258_v13 }
 0x656   :  { %v3950_v15 = vpop.f32.mrf.mxu1 }
 0x657   :  { %v1265_v16 = vsel %vm595_vm8, -1e+09, %v1263_v14  ;;  %v1898_v15 = vld [vmem:[%s4922_s4 + $0x10] sm:$0xff] }
 0x658   :  { %v1269_v17 = vsel %vm440_vm2, %v1265_v16, -inf }
 0x659   :  { %1270 = vmax.xlane.f32.xlu0 %v1269_v17 }
 0x661   :  { %1364 = vrot.lane.b32.xlu1 %v4453_v20, %s4321_s13 }
 0x665   :  { %1518 = vrot.lane.b32.xlu1 %v4453_v20, %s4322_s7 }
 0x669   :  { %1288 = vrot.lane.b32.xlu1 %v4451_v19, %s4321_s13 }
 0x66d   :  { %1440 = vrot.lane.b32.xlu1 %v4451_v19, %s4322_s7 }
 0x6d9   :  { %v1268_v18 = vpop.xlane.xlu1 %1267 }
 0x6da   :  { %v1272_v21 = vsub.f32 %v1264_v8, %v1268_v18  ;;  %v1899_v8 = vld [vmem:[%s4922_s4 + $0x18] sm:$0xff]  ;;  %v1896_v18 = vld [vmem:[%s4922_s4] sm:$0xff] }
 0x6dc   :  { %v1274_v22 = vmul.f32 1.442695, %v1272_v21  ;;  %v1808_v21 = vld [vmem:[%s4923_s5 + $0x10] sm:$0xff] }
 0x6dd   :  { %v1365_v23 = vpop.permute.xlu1 %1364 }
 0x6de   :  { %4161 = vpow2.f32 %v1274_v22  ;;  %3957 = vmatpush3.msra.mxu1 %v1365_v23  ;;  %v1807_v22 = vld [vmem:[%s4923_s5 + $0x8] sm:$0xff] }
 0x6df   :  { %3966 = vmatprep.subr.mxu1 %v4312_v10 }
 0x6e1   :  { %v1519_v24 = vpop.permute.xlu1 %1518 }
 0x6e2   :  { %v1271_v25 = vpop.xlane.xlu0 %1270 }
 0x6e3   :  { %v1273_v26 = vsub.f32 %v1265_v16, %v1271_v25 }
 0x6e5   :  { %v1276_v28 = vmul.f32 1.442695, %v1273_v26  ;;  %v1289_v29 = vpop.permute.xlu1 %1288 }
 0x6e6   :  { %3952 = vmatpush3.msra.mxu0 %v1289_v29 }
 0x6e7   :  { %4163 = vpow2.f32 %v1276_v28  ;;  %3961 = vmatprep.subr.mxu0 %v4312_v10  ;;  %v3723_v28 = vld [vmem:[%s4922_s4 + $0x20] ss:$0 sm:$0xff] }
 0x6e9   :  { %v1441_v41 = vpop.permute.xlu1 %1440 }
 0x6eb   :  { %v4162_v30 = vpop.eup %4161 }
 0x6ec   :  { %v1278_v31 = vsel %vm440_vm2, %v4162_v30, 0.0 }
 0x6ed   :  { %1279 = vadd.xlane.f32.xlu0 %v1278_v31 }
 0x6f4   :  { %v4164_v33 = vpop.eup %4163 }
 0x6f5   :  { %v1281_v34 = vsel %vm440_vm2, %v4164_v33, 0.0 }
 0x6f6   :  { %1282 = vadd.xlane.f32.xlu0 %v1281_v34 }
 0x70c   :  { %1520 = vrot.lane.b32.xlu0 %v4453_v20, %s4323_s14 }
 0x710   :  { %1442 = vrot.lane.b32.xlu0 %v4451_v19, %s4323_s14 }
 0x776   :  { %v1280_v35 = vpop.xlane.xlu0 %1279 }
 0x777   :  { %4165 = vrcp.f32 %v1280_v35 }
 0x77f   :  { %v1283_v36 = vpop.xlane.xlu0 %1282 }
 0x780   :  { %4167 = vrcp.f32 %v1283_v36 }
 0x783   :  { %v1521_v37 = vpop.permute.xlu0 %1520 }
 0x784   :  { %v4166_v38 = vpop.eup %4165 }
 0x785   :  { %v1286_v39 = vmul.f32 %v4166_v38, %v4162_v30 }
 0x787   :  { %3954 = vmatmul.mubr.msk.f32.vlgmr.msra.gmra.mxu0 %vm440_vm2, %v1286_v39  ;;  %v1443_v40 = vpop.permute.xlu0 %1442 }
 0x788   :  { %3962 = vmatpush3.xpose.msk.msra.mxu0 %vm440_vm2, %v1443_v40  ;;  %3963 = vmatprep.mubr.msk.f32.mxu0 %vm4313_vm1, %v4312_v10 }
 0x789   :  { %3971 = vmatprep.subr.mxu0 %v4312_v10 }
 0x78b   :  { %3964 = vmatmul.mubr.msk.f32.vlgmr.msra.gmra.mxu0 %vm440_vm2, %v1441_v41 }
 0x78c   :  { %3973 = vmatprep.mubr.msk.f32.mxu0 %vm4313_vm1, %v4312_v10 }
 0x78d   :  { %v4168_v42 = vpop.eup %4167 }
 0x78e   :  { %v1287_v43 = vmul.f32 %v4168_v42, %v4164_v33 }
 0x790   :  { %3959 = vmatmul.mubr.msk.f32.vlgmr.msra.gmra.mxu1 %vm440_vm2, %v1287_v43 }
 0x791   :  { %3967 = vmatpush3.xpose.msk.msra.mxu1 %vm440_vm2, %v1521_v37  ;;  %3968 = vmatprep.mubr.msk.f32.mxu1 %vm4313_vm1, %v4312_v10 }
 0x792   :  { %3976 = vmatprep.subr.mxu1 %v4312_v10 }
 0x794   :  { %3969 = vmatmul.mubr.msk.f32.vlgmr.msra.gmra.mxu1 %vm440_vm2, %v1519_v24 }
 0x795   :  { %3978 = vmatprep.mubr.msk.f32.mxu1 %vm4313_vm1, %v4312_v10 }
 0x847   :  { %v1360_v44 = vpop.f32.mrf.mxu0 }
 0x849   :  { %v3955_v45 = vpop.f32.mrf.mxu0 }
 0x84b   :  { %v1514_v46 = vpop.f32.mrf.mxu0 }
 0x84c   :  { %v1596_v47 = vmul.f32 0.35355338, %v1514_v46 }
 0x84d   :  { %v3965_v50 = vpop.f32.mrf.mxu0 }
 0x84e   :  { %v1598_v51 = vsel %vm594_vm5, -1e+09, %v1596_v47 }
 0x84f   :  { %v1600_v52 = vsel %vm440_vm2, %v1598_v51, -inf }
 0x850   :  { %1601 = vmax.xlane.f32.xlu1 %v1600_v52  ;;  %v1436_v53 = vpop.f32.mrf.mxu1 }
 0x852   :  { %v3960_v54 = vpop.f32.mrf.mxu1 }
 0x854   :  { %v1592_v55 = vpop.f32.mrf.mxu1 }
 0x855   :  { %v1597_v56 = vmul.f32 0.35355338, %v1592_v55 }
 0x856   :  { %v3970_v59 = vpop.f32.mrf.mxu1 }
 0x857   :  { %v1599_v60 = vsel %vm595_vm8, -1e+09, %v1597_v56 }
 0x858   :  { %v1603_v61 = vsel %vm440_vm2, %v1599_v60, -inf }
 0x859   :  { %1604 = vmax.xlane.f32.xlu0 %v1603_v61 }
 0x861   :  { %1698 = vrot.lane.b32.xlu1 %v4453_v20, %s4324_s15 }
 0x865   :  { %1776 = vrot.lane.b32.xlu1 %v4574_v1, %s4310_s19 }
 0x869   :  { %1778 = vrot.lane.b32.xlu1 %v4579_v11, %s4310_s19 }
 0x86d   :  { %1786 = vrot.lane.b32.xlu1 %v1436_v53, %s4325_s16 }
 0x8d9   :  { %v1602_v48 = vpop.xlane.xlu1 %1601 }
 0x8da   :  { %v1606_v57 = vsub.f32 %v1598_v51, %v1602_v48 }
 0x8dc   :  { %v1608_v3 = vmul.f32 1.442695, %v1606_v57 }
 0x8dd   :  { %v1699_v62 = vpop.permute.xlu1 %1698 }
 0x8de   :  { %3977 = vmatpush3.msra.mxu1 %v1699_v62 }
 0x8df   :  { %3992 = vmatprep.subr.mxu1 %v1899_v8 }
 0x8e1   :  { %v1777_v34 = vpop.permute.xlu1 %1776 }
 0x8e2   :  { %v1605_v63 = vpop.xlane.xlu0 %1604  ;;  %v1798_v38 = vsel %vm440_vm2, %v4532_v27, %v1777_v34 }
 0x8e3   :  { %v1607_v0 = vsub.f32 %v1599_v60, %v1605_v63 }
 0x8e5   :  { %v1610_v4 = vmul.f32 1.442695, %v1607_v0  ;;  %v1779_v35 = vpop.permute.xlu1 %1778 }
 0x8e6   :  { %v1799_v40 = vsel %vm440_vm2, %v4537_v32, %v1779_v35 }
 0x8e7   :  { %4169 = vpow2.f32 %v1610_v4 }
 0x8e8   :  { %4171 = vpow2.f32 %v1608_v3 }
 0x8e9   :  { %v1787_v36 = vpop.permute.xlu1 %1786 }
 0x8ea   :  { %v1802_v43 = vsel %vm1800_vm9, %v1799_v40, %v1787_v36 }
 0x8f4   :  { %v4170_v20 = vpop.eup %4169 }
 0x8f5   :  { %v1615_v6 = vsel %vm440_vm2, %v4170_v20, 0.0  ;;  %v4172_v1 = vpop.eup %4171 }
 0x8f6   :  { %1616 = vadd.xlane.f32.xlu0 %v1615_v6  ;;  %v1612_v7 = vsel %vm440_vm2, %v4172_v1, 0.0 }
 0x8fa   :  { %1613 = vadd.xlane.f32.xlu0 %v1612_v7 }
 0x910   :  { %1622 = vrot.lane.b32.xlu0 %v4451_v19, %s4324_s15  ;;  %v1897_v19 = vld [vmem:[%s4922_s4 + $0x8] sm:$0xff] }
 0x914   :  { %1784 = vrot.lane.b32.xlu0 %v1360_v44, %s4325_s16 }
 0x97f   :  { %v1617_v9 = vpop.xlane.xlu0 %1616 }
 0x980   :  { %4173 = vrcp.f32 %v1617_v9 }
 0x983   :  { %v1614_v11 = vpop.xlane.xlu0 %1613 }
 0x984   :  { %4175 = vrcp.f32 %v1614_v11 }
 0x987   :  { %v1623_v12 = vpop.permute.xlu0 %1622 }
 0x988   :  { %3972 = vmatpush3.msra.mxu0 %v1623_v12 }
 0x98b   :  { %v1785_v37 = vpop.permute.xlu0 %1784 }
 0x98c   :  { %v1801_v41 = vsel %vm1800_vm9, %v1798_v38, %v1785_v37 }
 0x98d   :  { %v4174_v13 = vpop.eup %4173 }
 0x98e   :  { %v1621_v14 = vmul.f32 %v4174_v13, %v4170_v20 }
 0x990   :  { %3979 = vmatmul.mubr.msk.f32.vlgmr.msra.gmra.mxu1 %vm440_vm2, %v1621_v14 }
 0x991   :  { %v4176_v16 = vpop.eup %4175  ;;  %3993 = vmatpush3.msra.mxu1 %v1899_v8  ;;  %4000 = vmatprep.mubr.msk.f32.mxu1 %vm91_vm0, %v4407_v2  ;;  %v1809_v2 = vld [vmem:[%s4923_s5 + $0x18] sm:$0xff] }
 0x992   :  { %3994 = vmatprep.subr.mxu1 %v1898_v15  ;;  %v1620_v17 = vmul.f32 %v4176_v16, %v4172_v1  ;;  %3981 = vmatprep.subr.mxu0 %v1809_v2 }
 0x993   :  { %3995 = vmatpush3.msra.mxu1 %v1898_v15 }
 0x994   :  { %3996 = vmatprep.subr.mxu1 %v1897_v19  ;;  %3974 = vmatmul.mubr.msk.f32.vlgmr.msra.gmra.mxu0 %vm440_vm2, %v1620_v17 }
 0x995   :  { %3997 = vmatpush3.msra.mxu1 %v1897_v19  ;;  %3982 = vmatpush3.msra.mxu0 %v1809_v2 }
 0x996   :  { %3998 = vmatprep.subr.mxu1 %v1896_v18  ;;  %3983 = vmatprep.subr.mxu0 %v1808_v21 }
 0x997   :  { %3999 = vmatpush3.msra.mxu1 %v1896_v18  ;;  %3984 = vmatpush3.msra.mxu0 %v1808_v21 }
 0x998   :  { %4001 = vmatmul.mubr.msk.f32.vlgmr.msra.gmra.mxu1 %vm91_vm0, %v4417_v5  ;;  %4008 = vmatprep.subr.mxu1 %v4312_v10  ;;  %v1806_v5 = vld [vmem:[%s4923_s5] sm:$0xff] }
 0x999   :  { %4010 = vmatprep.mubr.msk.f32.mxu1 %vm4313_vm1, %v4312_v10  ;;  %3985 = vmatprep.subr.mxu0 %v1807_v22 }
 0x99a   :  { %3986 = vmatpush3.msra.mxu0 %v1807_v22 }
 0x99b   :  { %3987 = vmatprep.subr.mxu0 %v1806_v5 }
 0x99c   :  { %3988 = vmatpush3.msra.mxu0 %v1806_v5 }
 0x99d   :  { %4003 = vmatprep.subr.mxu0 %v4312_v10 }
 0xa50   :  { %v1770_v23 = vpop.f32.mrf.mxu1 }
 0xa51   :  { %1794 = vrot.lane.b32.xlu1 %v1770_v23, %s4326_s23 }
 0xa52   :  { %v3980_v24 = vpop.f32.mrf.mxu1 }
 0xa54   :  { %v1694_v25 = vpop.f32.mrf.mxu0 }
 0xa55   :  { %1792 = vrot.lane.b32.xlu0 %v1694_v25, %s4326_s23 }
 0xa56   :  { %v3975_v26 = vpop.f32.mrf.mxu0 }
 0xa58   :  { %v4002_v29 = vpop.f32.mrf.mxu1 }
 0xa59   :  { %v4673_v30 = vadd.f32 %v4002_v29, %v3723_v28 }
 0xa5a   :  { %v1971_v31 = vpop.f32.mrf.mxu1 }
 0xa5b   :  { %v4675_v33 = vadd.f32 %v3723_v28, %v1971_v31  ;;  %2058 = vrot.lane.b32.xlu1 %v4673_v30, %s4314_s27 }
 0xa5d   :  { %1981 = vrot.lane.b32.xlu0 %v4675_v33, %s4314_s27 }
 0xac3   :  { %v1795_v39 = vpop.permute.xlu1 %1794 }
 0xac4   :  { %v1805_v45 = vsel %vm1803_vm10, %v1802_v43, %v1795_v39 }
 0xac7   :  { %v1793_v42 = vpop.permute.xlu0 %1792 }
 0xac8   :  { %v1804_v44 = vsel %vm1803_vm10, %v1801_v41, %v1793_v42 }
 0xac9   :  { %3989 = vmatprep.mubr.msk.f32.mxu0 %vm91_vm0, %v1804_v44 }
 0xaca   :  { %3990 = vmatmul.mubr.msk.f32.vlgmr.msra.gmra.mxu0 %vm91_vm0, %v1805_v45 }
 0xacb   :  { %4005 = vmatprep.mubr.msk.f32.mxu0 %vm4313_vm1, %v4312_v10 }
 0xacd   :  { %v2059_v27 = vpop.permute.xlu1 %2058 }
 0xace   :  { %4009 = vmatpush3.xpose.msk.msra.mxu1 %vm440_vm2, %v2059_v27 }
 0xacf   :  { %v1982_v32 = vpop.permute.xlu0 %1981  ;;  %4018 = vmatprep.subr.mxu1 %v4312_v10 }
 0xad0   :  { %4004 = vmatpush3.xpose.msk.msra.mxu0 %vm440_vm2, %v1982_v32 }
 0xad1   :  { %4011 = vmatmul.mubr.msk.f32.vlgmr.msra.gmra.mxu1 %vm440_vm2, %v4673_v30  ;;  %4013 = vmatprep.subr.mxu0 %v4312_v10 }
 0xad2   :  { %4020 = vmatprep.mubr.msk.f32.mxu1 %vm4313_vm1, %v4312_v10 }
 0xad3   :  { %4006 = vmatmul.mubr.msk.f32.vlgmr.msra.gmra.mxu0 %vm440_vm2, %v4675_v33 }
 0xad4   :  { %4015 = vmatprep.mubr.msk.f32.mxu0 %vm4313_vm1, %v4312_v10 }
 0xb8a   :  { %v4705_v46 = vpop.f32.mrf.mxu0 }
 0xb8c   :  { %v4707_v47 = vpop.f32.mrf.mxu0 }
 0xb91   :  { %v2130_v50 = vpop.f32.mrf.mxu1 }
 0xb92   :  { %v2135_v51 = vmul.f32 0.35355338, %v2130_v50 }
 0xb93   :  { %v2053_v52 = vpop.f32.mrf.mxu0  ;;  %v4012_v53 = vpop.f32.mrf.mxu1 }
 0xb94   :  { %v2134_v54 = vmul.f32 0.35355338, %v2053_v52  ;;  %v2139_v55 = vsel %vm2137_vm11, -1e+09, %v2135_v51 }
 0xb95   :  { %v4007_v56 = vpop.f32.mrf.mxu0  ;;  %v2143_v59 = vsel %vm440_vm2, %v2139_v55, -inf }
 0xb96   :  { %2144 = vmax.xlane.f32.xlu1 %v2143_v59  ;;  %v2138_v60 = vsel %vm2136_vm12, -1e+09, %v2134_v54 }
 0xb97   :  { %v2140_v61 = vsel %vm440_vm2, %v2138_v60, -inf }
 0xb98   :  { %2141 = vmax.xlane.f32.xlu0 %v2140_v61 }
 0xba7   :  { %2162 = vrot.lane.b32.xlu1 %v4675_v33, %s4315_s9 }
 0xbab   :  { %2316 = vrot.lane.b32.xlu1 %v4675_v33, %s4316_s0 }
 0xbaf   :  { %2394 = vrot.lane.b32.xlu1 %v4673_v30, %s4316_s0 }
 0xbb3   :  { %2392 = vrot.lane.b32.xlu1 %v4673_v30, %s4317_s29 }
 0xc1f   :  { %v2145_v48 = vpop.xlane.xlu1 %2144 }
 0xc20   :  { %v2147_v62 = vsub.f32 %v2139_v55, %v2145_v48 }
 0xc21   :  { %v2142_v57 = vpop.xlane.xlu0 %2141 }
 0xc22   :  { %v2150_v63 = vmul.f32 1.442695, %v2147_v62  ;;  %v2146_v0 = vsub.f32 %v2138_v60, %v2142_v57 }
 0xc23   :  { %v2163_v3 = vpop.permute.xlu1 %2162 }
 0xc24   :  { %4177 = vpow2.f32 %v2150_v63  ;;  %v2148_v4 = vmul.f32 1.442695, %v2146_v0  ;;  %4014 = vmatpush3.msra.mxu0 %v2163_v3 }
 0xc25   :  { %4023 = vmatprep.subr.mxu0 %v4312_v10 }
 0xc26   :  { %4179 = vpow2.f32 %v2148_v4 }
 0xc27   :  { %v2317_v11 = vpop.permute.xlu1 %2316 }
 0xc2b   :  { %v2395_v14 = vpop.permute.xlu1 %2394 }
 0xc2f   :  { %v2393_v17 = vpop.permute.xlu1 %2392 }
 0xc31   :  { %v4178_v20 = vpop.eup %4177 }
 0xc32   :  { %v2155_v6 = vsel %vm440_vm2, %v4178_v20, 0.0 }
 0xc33   :  { %v4180_v1 = vpop.eup %4179  ;;  %2156 = vadd.xlane.f32.xlu0 %v2155_v6 }
 0xc34   :  { %v2152_v7 = vsel %vm440_vm2, %v4180_v1, 0.0 }
 0xc37   :  { %2153 = vadd.xlane.f32.xlu0 %v2152_v7 }
 0xc4d   :  { %2238 = vrot.lane.b32.xlu0 %v4673_v30, %s4315_s9 }
 0xc51   :  { %2314 = vrot.lane.b32.xlu0 %v4675_v33, %s4317_s29 }
 0xcbc   :  { %v2157_v8 = vpop.xlane.xlu0 %2156 }
 0xcbd   :  { %4181 = vrcp.f32 %v2157_v8 }
 0xcc0   :  { %v2154_v9 = vpop.xlane.xlu0 %2153 }
 0xcc1   :  { %4183 = vrcp.f32 %v2154_v9 }
 0xcc4   :  { %v2239_v12 = vpop.permute.xlu0 %2238 }
 0xcc5   :  { %4019 = vmatpush3.msra.mxu1 %v2239_v12 }
 0xcc6   :  { %4028 = vmatprep.subr.mxu1 %v4312_v10 }
 0xcc8   :  { %v2315_v18 = vpop.permute.xlu0 %2314 }
 0xcca   :  { %v4182_v13 = vpop.eup %4181 }
 0xccb   :  { %v2161_v15 = vmul.f32 %v4182_v13, %v4178_v20 }
 0xccd   :  { %4021 = vmatmul.mubr.msk.f32.vlgmr.msra.gmra.mxu1 %vm440_vm2, %v2161_v15 }
 0xcce   :  { %v4184_v16 = vpop.eup %4183  ;;  %4029 = vmatpush3.xpose.msk.msra.mxu1 %vm440_vm2, %v2395_v14  ;;  %4030 = vmatprep.mubr.msk.f32.mxu1 %vm4313_vm1, %v4312_v10 }
 0xccf   :  { %v2160_v19 = vmul.f32 %v4184_v16, %v4180_v1  ;;  %4038 = vmatprep.subr.mxu1 %v4312_v10 }
 0xcd1   :  { %4016 = vmatmul.mubr.msk.f32.vlgmr.msra.gmra.mxu0 %vm440_vm2, %v2160_v19  ;;  %4031 = vmatmul.mubr.msk.f32.vlgmr.msra.gmra.mxu1 %vm440_vm2, %v2393_v17 }
 0xcd2   :  { %4024 = vmatpush3.xpose.msk.msra.mxu0 %vm440_vm2, %v2317_v11  ;;  %4025 = vmatprep.mubr.msk.f32.mxu0 %vm4313_vm1, %v4312_v10 }
 0xcd3   :  { %4033 = vmatprep.subr.mxu0 %v4312_v10  ;;  %4040 = vmatprep.mubr.msk.f32.mxu1 %vm4313_vm1, %v4312_v10 }
 0xcd5   :  { %4026 = vmatmul.mubr.msk.f32.vlgmr.msra.gmra.mxu0 %vm440_vm2, %v2315_v18 }
 0xcd6   :  { %4035 = vmatprep.mubr.msk.f32.mxu0 %vm4313_vm1, %v4312_v10 }
 0xd8d   :  { %v4749_v2 = vpop.f32.mrf.mxu1 }
 0xd8f   :  { %v4022_v21 = vpop.f32.mrf.mxu1 }
 0xd91   :  { %v4751_v22 = vpop.f32.mrf.mxu0  ;;  %v2466_v5 = vpop.f32.mrf.mxu1 }
 0xd92   :  { %v2471_v23 = vmul.f32 0.35355338, %v2466_v5 }
 0xd93   :  { %v4017_v24 = vpop.f32.mrf.mxu0  ;;  %v4032_v25 = vpop.f32.mrf.mxu1 }
 0xd94   :  { %v2473_v26 = vsel %vm2137_vm11, -1e+09, %v2471_v23 }
 0xd95   :  { %v2388_v28 = vpop.f32.mrf.mxu0  ;;  %v2477_v29 = vsel %vm440_vm2, %v2473_v26, -inf }
 0xd96   :  { %v2470_v31 = vmul.f32 0.35355338, %v2388_v28  ;;  %2478 = vmax.xlane.f32.xlu1 %v2477_v29 }
 0xd97   :  { %v4027_v34 = vpop.f32.mrf.mxu0 }
 0xd98   :  { %v2472_v35 = vsel %vm2136_vm12, -1e+09, %v2470_v31 }
 0xd99   :  { %v2474_v36 = vsel %vm440_vm2, %v2472_v35, -inf }
 0xd9a   :  { %2475 = vmax.xlane.f32.xlu0 %v2474_v36 }
 0xda7   :  { %2496 = vrot.lane.b32.xlu1 %v4675_v33, %s4318_s30 }
 0xdab   :  { %2650 = vrot.lane.b32.xlu1 %v4675_v33, %s4320_s12 }
 0xdaf   :  { %2728 = vrot.lane.b32.xlu1 %v4673_v30, %s4320_s12 }
 0xdb3   :  { %2726 = vrot.lane.b32.xlu1 %v4673_v30, %s4319_s11 }
 0xe1f   :  { %v2479_v37 = vpop.xlane.xlu1 %2478 }
 0xe20   :  { %v2481_v38 = vsub.f32 %v2473_v26, %v2479_v37 }
 0xe22   :  { %v2484_v39 = vmul.f32 1.442695, %v2481_v38 }
 0xe23   :  { %v2497_v40 = vpop.permute.xlu1 %2496  ;;  %v2476_v41 = vpop.xlane.xlu0 %2475 }
 0xe24   :  { %4185 = vpow2.f32 %v2484_v39  ;;  %v2480_v42 = vsub.f32 %v2472_v35, %v2476_v41  ;;  %4034 = vmatpush3.msra.mxu0 %v2497_v40 }
 0xe25   :  { %4043 = vmatprep.subr.mxu0 %v4312_v10 }
 0xe26   :  { %v2482_v43 = vmul.f32 1.442695, %v2480_v42 }
 0xe27   :  { %v2651_v52 = vpop.permute.xlu1 %2650 }
 0xe28   :  { %4187 = vpow2.f32 %v2482_v43 }
 0xe2b   :  { %v2729_v55 = vpop.permute.xlu1 %2728 }
 0xe2f   :  { %v2727_v61 = vpop.permute.xlu1 %2726 }
 0xe31   :  { %v4186_v44 = vpop.eup %4185 }
 0xe32   :  { %v2489_v45 = vsel %vm440_vm2, %v4186_v44, 0.0 }
 0xe33   :  { %2490 = vadd.xlane.f32.xlu0 %v2489_v45 }
 0xe35   :  { %v4188_v27 = vpop.eup %4187 }
 0xe36   :  { %v2486_v32 = vsel %vm440_vm2, %v4188_v27, 0.0 }
 0xe37   :  { %2487 = vadd.xlane.f32.xlu0 %v2486_v32 }
 0xe4d   :  { %2572 = vrot.lane.b32.xlu0 %v4673_v30, %s4318_s30 }
 0xe51   :  { %2648 = vrot.lane.b32.xlu0 %v4675_v33, %s4319_s11 }
 0xebc   :  { %v2491_v50 = vpop.xlane.xlu0 %2490 }
 0xebd   :  { %4189 = vrcp.f32 %v2491_v50 }
 0xec0   :  { %v2488_v51 = vpop.xlane.xlu0 %2487 }
 0xec1   :  { %4191 = vrcp.f32 %v2488_v51 }
 0xec4   :  { %v2573_v53 = vpop.permute.xlu0 %2572 }
 0xec5   :  { %4039 = vmatpush3.msra.mxu1 %v2573_v53 }
 0xec6   :  { %4048 = vmatprep.subr.mxu1 %v4312_v10 }
 0xec8   :  { %v2649_v48 = vpop.permute.xlu0 %2648 }
 0xeca   :  { %v4190_v54 = vpop.eup %4189 }
 0xecb   :  { %v2495_v56 = vmul.f32 %v4190_v54, %v4186_v44 }
 0xecd   :  { %4041 = vmatmul.mubr.msk.f32.vlgmr.msra.gmra.mxu1 %vm440_vm2, %v2495_v56 }
 0xece   :  { %v4192_v59 = vpop.eup %4191  ;;  %4049 = vmatpush3.xpose.msk.msra.mxu1 %vm440_vm2, %v2729_v55  ;;  %4050 = vmatprep.mubr.msk.f32.mxu1 %vm4313_vm1, %v4312_v10 }
 0xecf   :  { %v2494_v60 = vmul.f32 %v4192_v59, %v4188_v27  ;;  %4058 = vmatprep.subr.mxu1 %v4312_v10 }
 0xed1   :  { %4036 = vmatmul.mubr.msk.f32.vlgmr.msra.gmra.mxu0 %vm440_vm2, %v2494_v60  ;;  %4051 = vmatmul.mubr.msk.f32.vlgmr.msra.gmra.mxu1 %vm440_vm2, %v2727_v61 }
 0xed2   :  { %4044 = vmatpush3.xpose.msk.msra.mxu0 %vm440_vm2, %v2651_v52  ;;  %4045 = vmatprep.mubr.msk.f32.mxu0 %vm4313_vm1, %v4312_v10 }
 0xed3   :  { %4053 = vmatprep.subr.mxu0 %v4312_v10  ;;  %4060 = vmatprep.mubr.msk.f32.mxu1 %vm4313_vm1, %v4312_v10 }
 0xed5   :  { %4046 = vmatmul.mubr.msk.f32.vlgmr.msra.gmra.mxu0 %vm440_vm2, %v2649_v48 }
 0xed6   :  { %4055 = vmatprep.mubr.msk.f32.mxu0 %vm4313_vm1, %v4312_v10 }
 0xf8d   :  { %v4791_v62 = vpop.f32.mrf.mxu1 }
 0xf8f   :  { %v4042_v57 = vpop.f32.mrf.mxu1 }
 0xf91   :  { %v4793_v63 = vpop.f32.mrf.mxu0  ;;  %v2800_v0 = vpop.f32.mrf.mxu1 }
 0xf92   :  { %v2805_v3 = vmul.f32 0.35355338, %v2800_v0 }
 0xf93   :  { %v4037_v4 = vpop.f32.mrf.mxu0  ;;  %v4052_v20 = vpop.f32.mrf.mxu1 }
 0xf94   :  { %v2807_v6 = vsel %vm2137_vm11, -1e+09, %v2805_v3  ;;  %v3439_v3 = vld [vmem:[#allocation8 + $0x18] sm:$0xff] }
 0xf95   :  { %v2722_v1 = vpop.f32.mrf.mxu0  ;;  %v2811_v7 = vsel %vm440_vm2, %v2807_v6, -inf }
 0xf96   :  { %v2804_v8 = vmul.f32 0.35355338, %v2722_v1  ;;  %2812 = vmax.xlane.f32.xlu1 %v2811_v7 }
 0xf97   :  { %v4047_v9 = vpop.f32.mrf.mxu0 }
 0xf98   :  { %v2806_v11 = vsel %vm2136_vm12, -1e+09, %v2804_v8  ;;  %v3438_v8 = vld [vmem:[#allocation8 + $0x10] sm:$0xff]  ;;  %v3437_v9 = vld [vmem:[#allocation8 + $0x8] sm:$0xff] }
 0xf99   :  { %v2808_v12 = vsel %vm440_vm2, %v2806_v11, -inf }
 0xf9a   :  { %2809 = vmax.xlane.f32.xlu0 %v2808_v12  ;;  %v3436_v12 = vld [vmem:[#allocation8] sm:$0xff] }
 0xfa7   :  { %2830 = vrot.lane.b32.xlu1 %v4675_v33, %s4321_s13 }
 0xfab   :  { %2984 = vrot.lane.b32.xlu1 %v4675_v33, %s4323_s14 }
 0xfaf   :  { %3062 = vrot.lane.b32.xlu1 %v4673_v30, %s4323_s14 }
 0xfb3   :  { %3060 = vrot.lane.b32.xlu1 %v4673_v30, %s4322_s7 }
0x101f   :  { %v2813_v13 = vpop.xlane.xlu1 %2812 }
0x1020   :  { %v2815_v14 = vsub.f32 %v2807_v6, %v2813_v13  ;;  %v3720_v6 = vld [vmem:[%s4923_s5 + $0x20] ss:$0 sm:$0xff] }
0x1021   :  { %v1888_v7 = vadd.f32 %v3720_v6, %v4707_v47  ;;  %v1893_v13 = vadd.f32 %v4705_v46, %v3720_v6  ;;  %v3349_v47 = vld [vmem:[%s4924_s6 + $0x18] sm:$0xff]  ;;  %v3346_v46 = vld [vmem:[%s4924_s6] sm:$0xff] }
0x1022   :  { %v2818_v15 = vmul.f32 1.442695, %v2815_v14  ;;  %v3348_v14 = vld [vmem:[%s4924_s6 + $0x10] sm:$0xff] }
0x1023   :  { %v2831_v16 = vpop.permute.xlu1 %2830  ;;  %v2810_v19 = vpop.xlane.xlu0 %2809 }
0x1024   :  { %4193 = vpow2.f32 %v2818_v15  ;;  %v2814_v17 = vsub.f32 %v2806_v11, %v2810_v19  ;;  %4054 = vmatpush3.msra.mxu0 %v2831_v16  ;;  %v3347_v15 = vld [vmem:[%s4924_s6 + $0x8] sm:$0xff]  ;;  %v3529_v16 = vld [vmem:[%s4926_s8 + $0x18] sm:$0xff] }
0x1025   :  { %4063 = vmatprep.subr.mxu0 %v4312_v10 }
0x1026   :  { %v2816_v18 = vmul.f32 1.442695, %v2814_v17 }
0x1027   :  { %v2985_v28 = vpop.permute.xlu1 %2984 }
0x1028   :  { %4195 = vpow2.f32 %v2816_v18 }
0x102b   :  { %v3063_v34 = vpop.permute.xlu1 %3062 }
0x102f   :  { %v3061_v38 = vpop.permute.xlu1 %3060 }
0x1031   :  { %v4194_v21 = vpop.eup %4193 }
0x1032   :  { %v2823_v5 = vsel %vm440_vm2, %v4194_v21, 0.0 }
0x1033   :  { %2824 = vadd.xlane.f32.xlu0 %v2823_v5 }
0x1035   :  { %v4196_v23 = vpop.eup %4195 }
0x1036   :  { %v2820_v24 = vsel %vm440_vm2, %v4196_v23, 0.0 }
0x1037   :  { %2821 = vadd.xlane.f32.xlu0 %v2820_v24 }
0x104d   :  { %2906 = vrot.lane.b32.xlu0 %v4673_v30, %s4321_s13 }
0x1051   :  { %2982 = vrot.lane.b32.xlu0 %v4675_v33, %s4322_s7 }
0x10bc   :  { %v2825_v25 = vpop.xlane.xlu0 %2824 }
0x10bd   :  { %4197 = vrcp.f32 %v2825_v25 }
0x10c0   :  { %v2822_v26 = vpop.xlane.xlu0 %2821 }
0x10c1   :  { %4199 = vrcp.f32 %v2822_v26 }
0x10c4   :  { %v2907_v29 = vpop.permute.xlu0 %2906 }
0x10c5   :  { %4059 = vmatpush3.msra.mxu1 %v2907_v29 }
0x10c6   :  { %4068 = vmatprep.subr.mxu1 %v4312_v10 }
0x10c8   :  { %v2983_v39 = vpop.permute.xlu0 %2982 }
0x10ca   :  { %v4198_v31 = vpop.eup %4197 }
0x10cb   :  { %v2829_v35 = vmul.f32 %v4198_v31, %v4194_v21 }
0x10cd   :  { %4061 = vmatmul.mubr.msk.f32.vlgmr.msra.gmra.mxu1 %vm440_vm2, %v2829_v35 }
0x10ce   :  { %v4200_v36 = vpop.eup %4199  ;;  %4069 = vmatpush3.xpose.msk.msra.mxu1 %vm440_vm2, %v3063_v34  ;;  %4070 = vmatprep.mubr.msk.f32.mxu1 %vm4313_vm1, %v4312_v10 }
0x10cf   :  { %v2828_v37 = vmul.f32 %v4200_v36, %v4196_v23  ;;  %4078 = vmatprep.subr.mxu1 %v4312_v10 }
0x10d1   :  { %4056 = vmatmul.mubr.msk.f32.vlgmr.msra.gmra.mxu0 %vm440_vm2, %v2828_v37  ;;  %4071 = vmatmul.mubr.msk.f32.vlgmr.msra.gmra.mxu1 %vm440_vm2, %v3061_v38  ;;  %v3526_v38 = vld [vmem:[%s4926_s8] sm:$0xff] }
0x10d2   :  { %4064 = vmatpush3.xpose.msk.msra.mxu0 %vm440_vm2, %v2985_v28  ;;  %4065 = vmatprep.mubr.msk.f32.mxu0 %vm4313_vm1, %v4312_v10 }
0x10d3   :  { %4073 = vmatprep.subr.mxu0 %v4312_v10  ;;  %4080 = vmatprep.mubr.msk.f32.mxu1 %vm4313_vm1, %v4312_v10 }
0x10d5   :  { %4066 = vmatmul.mubr.msk.f32.vlgmr.msra.gmra.mxu0 %vm440_vm2, %v2983_v39 }
0x10d6   :  { %4075 = vmatprep.mubr.msk.f32.mxu0 %vm4313_vm1, %v4312_v10 }
0x118d   :  { %v2978_v40 = vpop.f32.mrf.mxu1 }
0x118f   :  { %v4062_v41 = vpop.f32.mrf.mxu1 }
0x1191   :  { %v2902_v42 = vpop.f32.mrf.mxu0  ;;  %v3134_v43 = vpop.f32.mrf.mxu1 }
0x1192   :  { %v3139_v44 = vmul.f32 0.35355338, %v3134_v43 }
0x1193   :  { %v4057_v45 = vpop.f32.mrf.mxu0  ;;  %v4072_v27 = vpop.f32.mrf.mxu1 }
0x1194   :  { %v3141_v32 = vsel %vm2137_vm11, -1e+09, %v3139_v44  ;;  %v3753_v45 = vld [vmem:[#allocation8 + $0x20] ss:$0 sm:$0xff] }
0x1195   :  { %v3056_v50 = vpop.f32.mrf.mxu0  ;;  %v3145_v51 = vsel %vm440_vm2, %v3141_v32, -inf  ;;  %v3756_v27 = vld [vmem:[%s4926_s8 + $0x20] ss:$0 sm:$0xff] }
0x1196   :  { %v3138_v52 = vmul.f32 0.35355338, %v3056_v50  ;;  %3146 = vmax.xlane.f32.xlu1 %v3145_v51 }
0x1197   :  { %v4067_v53 = vpop.f32.mrf.mxu0 }
0x1198   :  { %v3140_v54 = vsel %vm2136_vm12, -1e+09, %v3138_v52 }
0x1199   :  { %v3142_v10 = vsel %vm440_vm2, %v3140_v54, -inf }
0x119a   :  { %3143 = vmax.xlane.f32.xlu0 %v3142_v10 }
0x11a7   :  { %3164 = vrot.lane.b32.xlu1 %v4675_v33, %s4324_s15 }
0x11ab   :  { %3318 = vrot.lane.b32.xlu1 %v4793_v63, %s4310_s19 }
0x11af   :  { %3320 = vrot.lane.b32.xlu1 %v4791_v62, %s4310_s19 }
0x11b3   :  { %3328 = vrot.lane.b32.xlu1 %v2978_v40, %s4325_s16  ;;  %v3750_v40 = vld [vmem:[%s4924_s6 + $0x20] ss:$0 sm:$0xff]  ;;  %s4327_s6 = smov [#allocation9]  }
0x121f   :  { %v3147_v58 = vpop.xlane.xlu1 %3146 }
0x1220   :  { %v3149_v55 = vsub.f32 %v3141_v32, %v3147_v58 }
0x1222   :  { %v3152_v56 = vmul.f32 1.442695, %v3149_v55 }
0x1223   :  { %v3165_v59 = vpop.permute.xlu1 %3164  ;;  %v3144_v49 = vpop.xlane.xlu0 %3143 }
0x1224   :  { %4201 = vpow2.f32 %v3152_v56  ;;  %v3148_v60 = vsub.f32 %v3140_v54, %v3144_v49  ;;  %4074 = vmatpush3.msra.mxu0 %v3165_v59 }
0x1225   :  { %4083 = vmatprep.subr.mxu0 %v3349_v47 }
0x1226   :  { %v3150_v61 = vmul.f32 1.442695, %v3148_v60 }
0x1227   :  { %v3319_v5 = vpop.permute.xlu1 %3318 }
0x1228   :  { %4203 = vpow2.f32 %v3150_v61  ;;  %v3340_v26 = vsel %vm440_vm2, %v4751_v22, %v3319_v5  ;;  %v3528_v22 = vld [vmem:[%s4926_s8 + $0x10] sm:$0xff] }
0x122b   :  { %v3321_v23 = vpop.permute.xlu1 %3320 }
0x122c   :  { %v3341_v29 = vsel %vm440_vm2, %v4749_v2, %v3321_v23  ;;  %v3527_v2 = vld [vmem:[%s4926_s8 + $0x8] sm:$0xff]  ;;  %s3673_s8 = sshll.u32 %s4327_s6, 4  ;;  %s3674_s8 = int_to_ptr.vmem [resolvable:$true] %s3673_s8 }
0x122d   :  { %p4286_p2 = scmp.lt.s32.totalorder %s3674_s8, %s3674_s8 }
0x122f   :  { %v3329_v24 = vpop.permute.xlu1 %3328 }
0x1230   :  { %v3343_v35 = vsel %vm1800_vm9, %v3341_v29, %v3329_v24 }
0x1231   :  { %v4202_v48 = vpop.eup %4201 }
0x1232   :  { %v3157_v33 = vsel %vm440_vm2, %v4202_v48, 0.0 }
0x1233   :  { %3158 = vadd.xlane.f32.xlu0 %v3157_v33 }
0x1235   :  { %v4204_v57 = vpop.eup %4203 }
0x1236   :  { %v3154_v63 = vsel %vm440_vm2, %v4204_v57, 0.0 }
0x1237   :  { %3155 = vadd.xlane.f32.xlu0 %v3154_v63 }
0x124d   :  { %3240 = vrot.lane.b32.xlu0 %v4673_v30, %s4324_s15 }
0x1251   :  { %3326 = vrot.lane.b32.xlu0 %v2902_v42, %s4325_s16 }
0x12bc   :  { %v3159_v62 = vpop.xlane.xlu0 %3158 }
0x12bd   :  { %4205 = vrcp.f32 %v3159_v62 }
0x12c0   :  { %v3156_v0 = vpop.xlane.xlu0 %3155 }
0x12c1   :  { %4207 = vrcp.f32 %v3156_v0 }
0x12c4   :  { %v3241_v4 = vpop.permute.xlu0 %3240 }
0x12c5   :  { %4079 = vmatpush3.msra.mxu1 %v3241_v4 }
0x12c6   :  { %4094 = vmatprep.subr.mxu1 %v3439_v3 }
0x12c8   :  { %v3327_v25 = vpop.permute.xlu0 %3326 }
0x12c9   :  { %v3342_v31 = vsel %vm1800_vm9, %v3340_v26, %v3327_v25 }
0x12ca   :  { %v4206_v20 = vpop.eup %4205 }
0x12cb   :  { %v3163_v1 = vmul.f32 %v4206_v20, %v4202_v48 }
0x12cd   :  { %4081 = vmatmul.mubr.msk.f32.vlgmr.msra.gmra.mxu1 %vm440_vm2, %v3163_v1 }
0x12ce   :  { %v4208_v30 = vpop.eup %4207  ;;  %4095 = vmatpush3.msra.mxu1 %v3439_v3  ;;  %4102 = vmatprep.mubr.msk.f32.mxu1 %vm91_vm0, %v1888_v7 }
0x12cf   :  { %4096 = vmatprep.subr.mxu1 %v3438_v8  ;;  %v3162_v11 = vmul.f32 %v4208_v30, %v4204_v57 }
0x12d0   :  { %4097 = vmatpush3.msra.mxu1 %v3438_v8 }
0x12d1   :  { %4098 = vmatprep.subr.mxu1 %v3437_v9  ;;  %4076 = vmatmul.mubr.msk.f32.vlgmr.msra.gmra.mxu0 %vm440_vm2, %v3162_v11 }
0x12d2   :  { %4099 = vmatpush3.msra.mxu1 %v3437_v9  ;;  %4084 = vmatpush3.msra.mxu0 %v3349_v47 }
0x12d3   :  { %4100 = vmatprep.subr.mxu1 %v3436_v12  ;;  %4085 = vmatprep.subr.mxu0 %v3348_v14 }
0x12d4   :  { %4101 = vmatpush3.msra.mxu1 %v3436_v12  ;;  %4086 = vmatpush3.msra.mxu0 %v3348_v14 }
0x12d5   :  { %4103 = vmatmul.mubr.msk.f32.vlgmr.msra.gmra.mxu1 %vm91_vm0, %v1893_v13  ;;  %4087 = vmatprep.subr.mxu0 %v3347_v15 }
0x12d6   :  { %4088 = vmatpush3.msra.mxu0 %v3347_v15 }
0x12d7   :  { %4089 = vmatprep.subr.mxu0 %v3346_v46 }
0x12d8   :  { %4090 = vmatpush3.msra.mxu0 %v3346_v46 }
0x12d9   :  { %4105 = vmatprep.subr.mxu0 %v3529_v16 }
0x138d   :  { %v3312_v19 = vpop.f32.mrf.mxu1 }
0x138e   :  { %3336 = vrot.lane.b32.xlu1 %v3312_v19, %s4326_s23 }
0x138f   :  { %v4082_v17 = vpop.f32.mrf.mxu1 }
0x1391   :  { %v3236_v18 = vpop.f32.mrf.mxu0 }
0x1392   :  { %3334 = vrot.lane.b32.xlu0 %v3236_v18, %s4326_s23 }
0x1393   :  { %v4077_v21 = vpop.f32.mrf.mxu0 }
0x1395   :  { %v4104_v44 = vpop.f32.mrf.mxu1 }
0x1396   :  { %v3523_v51 = vadd.f32 %v4104_v44, %v3753_v45 }
0x1397   :  { %v3517_v32 = vpop.f32.mrf.mxu1 }
0x1398   :  { %v3518_v54 = vadd.f32 %v3753_v45, %v3517_v32 }
0x1400   :  { %v3337_v28 = vpop.permute.xlu1 %3336 }
0x1401   :  { %v3345_v37 = vsel %vm1803_vm10, %v3343_v35, %v3337_v28 }
0x1404   :  { %v3335_v34 = vpop.permute.xlu0 %3334 }
0x1405   :  { %v3344_v36 = vsel %vm1803_vm10, %v3342_v31, %v3335_v34 }
0x1406   :  { %4091 = vmatprep.mubr.msk.f32.mxu0 %vm91_vm0, %v3344_v36 }
0x1407   :  { %4092 = vmatmul.mubr.msk.f32.vlgmr.msra.gmra.mxu0 %vm91_vm0, %v3345_v37 }
0x1408   :  { %4106 = vmatpush3.msra.mxu0 %v3529_v16 }
0x1409   :  { %4107 = vmatprep.subr.mxu0 %v3528_v22 }
0x140a   :  { %4108 = vmatpush3.msra.mxu0 %v3528_v22 }
0x140b   :  { %4109 = vmatprep.subr.mxu0 %v3527_v2 }
0x140c   :  { %4110 = vmatpush3.msra.mxu0 %v3527_v2 }
0x140d   :  { %4111 = vmatprep.subr.mxu0 %v3526_v38 }
0x140e   :  { %4112 = vmatpush3.msra.mxu0 %v3526_v38 }
0x14c7   :  { %v4093_v39 = vpop.f32.mrf.mxu0 }
0x14c8   :  { %v3433_v43 = vadd.f32 %v4093_v39, %v3750_v40 }
0x14c9   :  { %v3427_v41 = vpop.f32.mrf.mxu0 }
0x14ca   :  { %v3428_v42 = vadd.f32 %v3750_v40, %v3427_v41 }
0x14cc   :  { %4113 = vmatprep.mubr.msk.f32.mxu0 %vm91_vm0, %v3428_v42 }
0x14cd   :  { %4114 = vmatmul.mubr.msk.f32.vlgmr.msra.gmra.mxu0 %vm91_vm0, %v3433_v43 }
0x158d   :  { %v4115_v50 = vpop.f32.mrf.mxu0 }
0x158e   :  { %v3613_v52 = vadd.f32 %v4115_v50, %v3756_v27 }
0x158f   :  { %v3607_v53 = vpop.f32.mrf.mxu0 }
0x1590   :  { %v3617_v10 = vmax.f32 %v3523_v51, %v3613_v52  ;;  %v3608_v58 = vadd.f32 %v3756_v27, %v3607_v53 }
0x1592   :  { %v3619_v55 = vsub.f32 %v3523_v51, %v3617_v10  ;;  %v3625_v56 = vsub.f32 %v3613_v52, %v3617_v10  ;;  %v3616_v59 = vmax.f32 %v3518_v54, %v3608_v58 }
0x1594   :  { %v3622_v49 = vmul.f32 1.442695, %v3619_v55  ;;  %v3628_v60 = vmul.f32 1.442695, %v3625_v56  ;;  %v3618_v61 = vsub.f32 %v3518_v54, %v3616_v59  ;;  %v3624_v48 = vsub.f32 %v3608_v58, %v3616_v59 }
0x1596   :  { %4209 = vpow2.f32 %v3622_v49  ;;  %v3620_v33 = vmul.f32 1.442695, %v3618_v61  ;;  %v3626_v57 = vmul.f32 1.442695, %v3624_v48 }
0x1597   :  { %4211 = vpow2.f32 %v3628_v60 }
0x1598   :  { %4213 = vpow2.f32 %v3620_v33 }
0x1599   :  { %4215 = vpow2.f32 %v3626_v57 }
0x15a3   :  { %v4210_v63 = vpop.eup %4209 }
0x15a4   :  { %v4212_v62 = vpop.eup %4211  ;;  %3634 = vrot.lane.b32.xlu1 %v4210_v63, %s4314_s27 }
0x15a5   :  { %v4214_v0 = vpop.eup %4213  ;;  %v3653_v3 = vadd.f32 %v4212_v62, %v4210_v63 }
0x15a6   :  { %v4216_v4 = vpop.eup %4215  ;;  %3632 = vrot.lane.b32.xlu0 %v4214_v0, %s4314_s27 }
0x15a7   :  { %4217 = vrcp.f32 %v3653_v3  ;;  %v3652_v20 = vadd.f32 %v4216_v4, %v4214_v0 }
0x15a8   :  { %3644 = vrot.lane.b32.xlu1 %v4212_v62, %s4314_s27 }
0x15a9   :  { %4219 = vrcp.f32 %v3652_v20 }
0x15aa   :  { %3642 = vrot.lane.b32.xlu0 %v4216_v4, %s4314_s27 }
0x15b4   :  { %v4218_v6 = vpop.eup %4217 }
0x15b5   :  { %3660 = vrot.lane.b32.xlu1 %v4218_v6, %s4314_s27 }
0x15b6   :  { %v4220_v1 = vpop.eup %4219 }
0x15b7   :  { %3658 = vrot.lane.b32.xlu0 %v4220_v1, %s4314_s27  ;;  %s4281_s27 = scalar_lea.vmem %s3674_s8, 256 }
0x15b8   :  { %p4282_p1 = scmp.ne.s32.totalorder %s3674_s8, %s4281_s27  ;;  %p4287_p3 = scmp.lt.s32.totalorder %s4281_s27, %s4281_s27 }
0x15ba   :  { %p4288_p4 = por %p4287_p3, %p4286_p2 }
0x15bc   :  { %p4289_p5 = pnand %p4288_p4, %p4282_p1 }
0x1616   :  { %v3635_v7 = vpop.permute.xlu1 %3634 }
0x1617   :  { %v3639_v12 = vmul.f32 %v3635_v7, %v3523_v51 }
0x1618   :  { %v3633_v8 = vpop.permute.xlu0 %3632 }
0x1619   :  { %v3638_v47 = vmul.f32 %v3633_v8, %v3518_v54 }
0x161a   :  { %v3645_v30 = vpop.permute.xlu1 %3644 }
0x161b   :  { %v3649_v11 = vmul.f32 %v3645_v30, %v3613_v52 }
0x161c   :  { %v3643_v9 = vpop.permute.xlu0 %3642 }
0x161d   :  { %v3648_v13 = vmul.f32 %v3643_v9, %v3608_v58  ;;  %v3651_v14 = vadd.f32 %v3649_v11, %v3639_v12 }
0x161f   :  { %v3650_v16 = vadd.f32 %v3648_v13, %v3638_v47 }
0x1627   :  { %v3661_v15 = vpop.permute.xlu1 %3660 }
0x1628   :  { %v3665_v46 = vmul.f32 %v3661_v15, %v3651_v14 }
0x1629   :  { %v3659_v19 = vpop.permute.xlu0 %3658 }
0x162a   :  { %3667 = vst.msk [vmem:[#allocation9 + $0x8] sm:$0xff] %vm91_vm0, %v3665_v46  ;;  %v3664_v17 = vmul.f32 %v3659_v19, %v3650_v16 }
0x162c   :  { %3666 = vst.msk [vmem:[#allocation9] sm:$0xff] %vm91_vm0, %v3664_v17 }
0x162d   :  { %4292 = shalt.err (!%p4289_p5)
}
0x162e   :  { %3679 = dma.vmem_to_hbm [thread:$0]  %s3674_s8, 256, %s4928_s10, [#allocation5], %s4309_s18, %s4309_s18, %s4310_s19  }
0x162f   :  { %4305 = dma.done.wait [#allocation5], 256  }
0x1630   :  { %4306 = vsyncadd [#allocation5], 4294967040 }
0x1631   :  { %3683 = vsyncpa [#allocation4], 1 }
0x1632   :  { %3684 = vsyncpa [#allocation7], 1 }
0x1633   :  { %3685 = vsyncpa [#allocation5], 1 }

</bundles_post_ra>
